<compile_context>
chip_gen: v5e
topology: v5e:2x2
jax: 0.10.0
libtpu: 0.0.40
codegen_flags: <defaults>
</compile_context>

<pallas_src>
import functools
import math

import jax
import jax.numpy as jnp
from jax import lax
from jax.experimental import pallas as pl
from jax.experimental.pallas import tpu as pltpu

# High-precision matmul only where needed (batch-invariant precompute + reference).
_hdot = functools.partial(jnp.matmul, precision=jax.lax.Precision.HIGHEST)


def adapter_kernel(img_ref, wcat_ref, rsc_ref, txtvf_ref, r12_ref, r3_ref,
                   stats_ref, ln_ref, out_ref, *, n_txt, d, n_pad, eps_ln, eps_cos):
    f32 = jnp.float32
    n = n_txt

    x_bf = img_ref[...]                                   # (B, D) bf16 image tokens
    b = x_bf.shape[0]
    x = x_bf.astype(f32)

    lnp = ln_ref[...]                                     # (3, D): [bfc, gamma, beta]
    bfc = lnp[0:1, :]
    g = lnp[1:2, :]
    b2 = lnp[2:3, :]

    st = stats_ref[...]                                   # (17, n) per-text scalars
    m_tt, ett_sum = st[0:1, :], st[1:2, :]
    mp, mc = st[2:3, :], st[3:4, :]
    S_pp, S_cc, S_pc = st[4:5, :], st[5:6, :], st[6:7, :]
    G_pp, G_cc, G_pc = st[7:8, :], st[8:9, :], st[9:10, :]
    Gp, Gc = st[10:11, :], st[11:12, :]
    Bp, Bc = st[12:13, :], st[13:14, :]
    G2, GB, B2 = st[14:15, :], st[15:16, :], st[16:17, :]

    # --- fused projections: [q | k | vf] = x @ [Wq/temp | Wk | Wv@Wfc]  (bf16 in, f32 acc)
    qkv = jnp.dot(x_bf, wcat_ref[...], preferred_element_type=f32)        # (B, 3D)
    img_q = qkv[:, 0:d]
    img_k = qkv[:, d:2 * d]
    u = qkv[:, 2 * d:3 * d]                               # img_vf = (x @ Wv) @ Wfc

    # --- fused scores: [s_it | s_ti] = qkv @ rhs_sc (zero-structured RHS, one MXU issue)
    s_cat = jnp.dot(qkv, rsc_ref[...], preferred_element_type=f32)        # (B, 2n)
    s_it = s_cat[:, 0:n]                                  # img query  x  txt keys
    s_ti = s_cat[:, n:2 * n]                              # txt queries x  img key
    s_ii = jnp.sum(img_q * img_k, axis=-1, keepdims=True)                 # (B, 1)

    # --- image-query row: softmax over [img | txt...] keys, fc-projected output, LN ---
    m_img = jnp.maximum(s_ii, jnp.max(s_it, axis=-1, keepdims=True))
    e_ii = jnp.exp(s_ii - m_img)
    e_it = jnp.exp(s_it - m_img)
    den_i = e_ii + jnp.sum(e_it, axis=-1, keepdims=True)
    r_img = pl.reciprocal(den_i, approx=True)
    r_img = r_img * (2.0 - den_i * r_img)                 # one Newton step (near-exact)
    proj_img = (e_ii * u +
                jnp.dot(e_it, txtvf_ref[...], preferred_element_type=f32)) * r_img
    y0 = proj_img + bfc + x                               # fc bias + residual
    mu0 = jnp.mean(y0, axis=-1, keepdims=True)
    var0 = jnp.mean(jnp.square(y0 - mu0), axis=-1, keepdims=True)
    y_img = (y0 - mu0) * lax.rsqrt(var0 + eps_ln) * g + b2                # (B, D)
    img_n2 = jnp.sum(y_img * y_img, axis=-1, keepdims=True)               # (B, 1)

    # --- text-query rows: split softmax (image key + precomputed txt-key part) ---
    m_t = jnp.maximum(s_ti, m_tt)
    e_ti = jnp.exp(s_ti - m_t)
    scl = jnp.exp(m_tt - m_t)
    den_t = e_ti + scl * ett_sum
    r_t = pl.reciprocal(den_t, approx=True)
    r_t = r_t * (2.0 - den_t * r_t)
    alpha = e_ti * r_t                                    # weight on the image value
    betaw = scl * r_t                                     # weight on precomputed txt values

    # --- closed-form LayerNorm / cosine moments for all text rows at once ---
    # y_i = alpha*u + betaw*p_i + c_i  with p_i = ett_vf[i], c_i = txt_i + bfc.
    m12 = jnp.dot(u, r12_ref[...], preferred_element_type=f32)            # (B, 4n+3)
    S_up, S_uc = m12[:, 0:n], m12[:, n:2 * n]             # sum u*p, sum u*c
    G_up, G_uc = m12[:, 2 * n:3 * n], m12[:, 3 * n:4 * n] # sum g^2*u*p, sum g^2*u*c
    mu_u = m12[:, 4 * n:4 * n + 1]                        # mean(u)
    Gu = m12[:, 4 * n + 1:4 * n + 2]                      # sum g^2*u
    Bu = m12[:, 4 * n + 2:4 * n + 3]                      # sum g*beta*u

    m3 = jnp.dot(y_img, r3_ref[...], preferred_element_type=f32)          # (B, 2n+2)
    T_p, T_c = m3[:, 0:n], m3[:, n:2 * n]                 # sum y_img*g*p, sum y_img*g*c
    Zg = m3[:, 2 * n:2 * n + 1]                           # sum y_img*g
    Zb = m3[:, 2 * n + 1:2 * n + 2]                       # sum y_img*beta

    gu = g * u
    S_uu = jnp.sum(u * u, axis=-1, keepdims=True)
    G_uu = jnp.sum(gu * gu, axis=-1, keepdims=True)
    T_u = jnp.sum(y_img * gu, axis=-1, keepdims=True)

    a2, b2w, ab = alpha * alpha, betaw * betaw, alpha * betaw
    mu_t = alpha * mu_u + betaw * mp + mc
    Sy2 = a2 * S_uu + b2w * S_pp + S_cc + 2.0 * (ab * S_up + alpha * S_uc + betaw * S_pc)
    var_t = jnp.maximum(Sy2 * (1.0 / d) - mu_t * mu_t, 0.0)
    inv_std = lax.rsqrt(var_t + eps_ln)

    dots = inv_std * (alpha * T_u + betaw * T_p + T_c - mu_t * Zg) + Zb
    Gy2 = a2 * G_uu + b2w * G_pp + G_cc + 2.0 * (ab * G_up + alpha * G_uc + betaw * G_pc)
    Gy1 = alpha * Gu + betaw * Gp + Gc
    By1 = alpha * Bu + betaw * Bp + Bc
    t_n2 = (inv_std * inv_std * (Gy2 - 2.0 * mu_t * Gy1 + mu_t * mu_t * G2)
            + 2.0 * inv_std * (By1 - mu_t * GB) + B2)

    # cosine sim: dots / max(||img||*||txt||, eps)  ==  dots * rsqrt(max(n1*n2, eps^2))
    logits = dots * lax.rsqrt(jnp.maximum(img_n2 * t_n2, eps_cos * eps_cos))

    if n_pad > n:   # lane-dense (B, n_pad) store; padded columns sliced off in wrapper
        logits = jnp.concatenate([logits, jnp.zeros((b, n_pad - n), f32)], axis=-1)
    out_ref[...] = logits


def adapter_forward(img_feats, txt_feats, params, *, b_tile=None):
    wq, wk, wv, wfc, bfc, gamma, beta = params
    bs, D = img_feats.shape
    n = txt_feats.shape[0]
    f32 = jnp.float32
    n_pad = ((n + 127) // 128) * 128

    inv_temp = 1.0 / math.sqrt(D)             # temperature = d_k ** 0.5, d_k = D

    # ---------- batch-invariant precompute (hoisted out of the hot loop) ----------
    wq_s = wq * inv_temp                      # fold 1/temperature into Wq
    wvf = _hdot(wv, wfc)                      # fold the fc projection into Wv
    w_cat = jnp.concatenate([wq_s, wk, wvf], axis=1)                     # (D, 3D)

    txt_q = _hdot(txt_feats, wq_s)            # (n, D) scaled text queries
    txt_k = _hdot(txt_feats, wk)              # (n, D)
    txt_vf = _hdot(_hdot(txt_feats, wv), wfc) # (n, D) fc-projected text values
    s_tt = _hdot(txt_q, txt_k.T)              # (n, n) txt<->txt scores
    m_tt = jnp.max(s_tt, axis=-1, keepdims=True)
    e_tt = jnp.exp(s_tt - m_tt)
    ett_sum = jnp.sum(e_tt, axis=-1, keepdims=True)
    ett_vf = _hdot(e_tt, txt_vf)              # (n, D) precomputed weighted/projected values
    c_txt = txt_feats + bfc                   # (n, D) residual + fc bias for text rows

    g, b2 = gamma, beta                       # (1, D)
    g2, gb = g * g, g * b2

    # fused img<->txt score RHS: [s_it | s_ti] = [q | k | vf] @ rhs_sc
    rhs_sc = jnp.zeros((3 * D, 2 * n), f32)
    rhs_sc = rhs_sc.at[0:D, 0:n].set(txt_k.T)
    rhs_sc = rhs_sc.at[D:2 * D, n:2 * n].set(txt_q.T)

    # right-hand packs for the closed-form moment matmuls
    ones_col = jnp.full((D, 1), 1.0 / D, f32)
    r12 = jnp.concatenate(
        [ett_vf.T, c_txt.T, (ett_vf * g2).T, (c_txt * g2).T,
         ones_col, g2.T, gb.T], axis=1).astype(f32)                       # (D, 4n+3)
    r3 = jnp.concatenate(
        [(ett_vf * g).T, (c_txt * g).T, g.T, b2.T], axis=1).astype(f32)   # (D, 2n+2)

    def rsum(a):                               # (n, D) -> (1, n) row sums
        return jnp.sum(a, axis=-1)[None, :]

    stats = jnp.concatenate([
        m_tt.T, ett_sum.T,
        rsum(ett_vf) / D, rsum(c_txt) / D,
        rsum(ett_vf * ett_vf), rsum(c_txt * c_txt), rsum(ett_vf * c_txt),
        rsum(ett_vf * ett_vf * g2), rsum(c_txt * c_txt * g2), rsum(ett_vf * c_txt * g2),
        rsum(ett_vf * g2), rsum(c_txt * g2),
        rsum(ett_vf * gb), rsum(c_txt * gb),
        jnp.full((1, n), jnp.sum(g2), f32),
        jnp.full((1, n), jnp.sum(gb), f32),
        jnp.full((1, n), jnp.sum(b2 * b2), f32),
    ], axis=0).astype(f32)                                                # (17, n)

    ln_pack = jnp.concatenate([bfc, g, b2], axis=0).astype(f32)           # (3, D)

    # bf16 MXU feed for the streamed image tile and the big projection weight pack;
    # the tiny moment/score packs stay f32 (accuracy of the closed-form moments).
    w_cat_bf = w_cat.astype(jnp.bfloat16)

    # ---------- tiling & VMEM plan ----------
    def _pad_bytes(shape, itemsize):          # one VMEM buffer, (8/16,128)-tiled
        r = shape[-2] if len(shape) > 1 else 1
        c = shape[-1]
        sub = 8 if itemsize == 4 else 16
        return ((r + sub - 1) // sub) * sub * ((c + 127) // 128) * 128 * itemsize

    resident = (_pad_bytes((D, 3 * D), 2) + _pad_bytes((3 * D, 2 * n), 4)
                + _pad_bytes((n, D), 4) + _pad_bytes((D, 4 * n + 3), 4)
                + _pad_bytes((D, 2 * n + 2), 4) + _pad_bytes((17, n), 4)
                + _pad_bytes((3, D), 4))

    if b_tile is None:
        # big tiles amortize the ~0.35us/step overhead; tiny batches run in 1 step
        b_tile = min(512, ((bs + 7) // 8) * 8)
    b_tile = max(8, ((b_tile + 7) // 8) * 8)

    def _plan_bytes(bt):                      # resident packs + double-buffered img/out
        return resident + 2 * (_pad_bytes((bt, D), 2) + _pad_bytes((bt, n_pad), 4))

    while b_tile > 8 and _plan_bytes(b_tile) > (48 << 20):   # v7x: 64 MiB/core physical
        b_tile = max(8, (((b_tile // 2) + 7) // 8) * 8)
    bs_pad = ((bs + b_tile - 1) // b_tile) * b_tile
    vmem_limit = int(min(max(2 * _plan_bytes(b_tile), 32 << 20), 56 << 20))

    img_pad = jnp.pad(img_feats, ((0, bs_pad - bs), (0, 0))).astype(jnp.bfloat16)

    kernel = functools.partial(adapter_kernel, n_txt=n, d=D, n_pad=n_pad,
                               eps_ln=1e-5, eps_cos=1e-8)

    def _run(single_buffer_consts):
        def cspec(shape):                     # grid-invariant pack (constant index map)
            idx = lambda b: (0,) * len(shape)
            if single_buffer_consts:
                return pl.BlockSpec(shape, idx, pipeline_mode=pl.Buffered(1))
            return pl.BlockSpec(shape, idx)

        return pl.pallas_call(
            kernel,
            out_shape=jax.ShapeDtypeStruct((bs_pad, n_pad), f32),
            grid=(bs_pad // b_tile,),
            in_specs=[
                pl.BlockSpec((b_tile, D), lambda b: (b, 0)),   # streamed image rows (bf16)
                cspec((D, 3 * D)),                             # [Wq/temp | Wk | Wv@Wfc] bf16
                cspec((3 * D, 2 * n)),                         # fused score RHS
                cspec((n, D)),                                 # txt_vf
                cspec((D, 4 * n + 3)),                         # moment RHS for img_vf
                cspec((D, 2 * n + 2)),                         # moment RHS for y_img
                cspec((17, n)),                                # per-text scalar stats
                cspec((3, D)),                                 # [bfc, gamma, beta]
            ],
            out_specs=pl.BlockSpec((b_tile, n_pad), lambda b: (b, 0)),
            compiler_params=pltpu.CompilerParams(
                dimension_semantics=("parallel",),
                vmem_limit_bytes=vmem_limit),
        )(img_pad, w_cat_bf, rhs_sc, txt_vf, r12, r3, stats, ln_pack)

    try:
        out = _run(True)
    except Exception:
        # pl.Buffered(1) not supported on this jax build -> default double-buffering
        out = _run(False)
    return out[:bs, :n]


def init_params(D, key):
    k1, k2, k3, k4, k5 = jax.random.split(key, 5)
    std_qk = math.sqrt(2.0 / (D + D))
    # weights stored pre-transposed as (in, out) so the forward computes x @ W
    wq = jax.random.normal(k1, (D, D), jnp.float32) * std_qk
    wk = jax.random.normal(k2, (D, D), jnp.float32) * std_qk
    wv = jax.random.normal(k3, (D, D), jnp.float32) * std_qk
    wfc = jax.random.normal(k4, (D, D), jnp.float32) * std_qk             # xavier_normal
    bound = 1.0 / math.sqrt(D)
    bfc = jax.random.uniform(k5, (1, D), jnp.float32, -bound, bound)
    gamma = jnp.ones((1, D), jnp.float32)                                 # LayerNorm defaults
    beta = jnp.zeros((1, D), jnp.float32)
    return wq, wk, wv, wfc, bfc, gamma, beta


def adapter_reference(img_feats, txt_feats, params):
    """Pure-JAX f32 reference of the PyTorch forward (dropout = identity)."""
    wq, wk, wv, wfc, bfc, gamma, beta = params
    bs, D = img_feats.shape
    n_txt = txt_feats.shape[0]
    comb = jnp.concatenate(
        [img_feats[:, None, :],
         jnp.broadcast_to(txt_feats[None, :, :], (bs, n_txt, D))], axis=1)
    q = _hdot(comb, wq)
    k = _hdot(comb, wk)
    v = _hdot(comb, wv)
    attn = _hdot(q, jnp.swapaxes(k, 1, 2)) / math.sqrt(D)
    p = jax.nn.softmax(attn, axis=-1)
    o = _hdot(p, v)
    o = _hdot(o, wfc) + bfc[0]
    y = o + comb
    mu = jnp.mean(y, axis=-1, keepdims=True)
    var = jnp.mean((y - mu) ** 2, axis=-1, keepdims=True)
    y = (y - mu) / jnp.sqrt(var + 1e-5) * gamma[0] + beta[0]
    img_u, txt_u = y[:, 0, :], y[:, 1:, :]
    dots = jnp.sum(img_u[:, None, :] * txt_u, axis=-1)
    denom = jnp.maximum(
        jnp.linalg.norm(img_u, axis=-1)[:, None] * jnp.linalg.norm(txt_u, axis=-1), 1e-8)
    return dots / denom


if __name__ == "__main__":
    bs, n_txt, D = 16, 7, 32
    key = jax.random.PRNGKey(0)
    k_img, k_txt, k_par = jax.random.split(key, 3)
    img_feats = jax.random.normal(k_img, (bs, D), jnp.float32)
    txt_feats = jax.random.normal(k_txt, (n_txt, D), jnp.float32)
    params = init_params(D, k_par)

    # Default tiling -> single grid step for this tiny batch (per perf review).
    logits = adapter_forward(img_feats, txt_feats, params)
    jax.block_until_ready(logits)
    assert logits.shape == (bs, n_txt)

    ref = adapter_reference(img_feats, txt_feats, params)
    # Tolerance reflects the bf16 MXU feed of the image tile / fused weight pack
    # (perf review); set the two .astype(jnp.bfloat16) casts to float32 for ~1e-4.
    err = float(jnp.max(jnp.abs(logits - ref)))
    assert jnp.allclose(logits, ref, atol=3e-2, rtol=3e-2), err
    print("KERNEL_OK")
</pallas_src>

<mosaic_0001>
module attributes {stable_mosaic.version = 11 : i64} {
  func.func @adapter_kernel(%arg0: i32, %arg1: memref<16x32xbf16, #tpu.memory_space<vmem>>, %arg2: memref<32x96xbf16, #tpu.memory_space<vmem>>, %arg3: memref<96x14xf32, #tpu.memory_space<vmem>>, %arg4: memref<7x32xf32, #tpu.memory_space<vmem>>, %arg5: memref<32x31xf32, #tpu.memory_space<vmem>>, %arg6: memref<32x16xf32, #tpu.memory_space<vmem>>, %arg7: memref<17x7xf32, #tpu.memory_space<vmem>>, %arg8: memref<3x32xf32, #tpu.memory_space<vmem>>, %arg9: memref<16x128xf32, #tpu.memory_space<vmem>>) attributes {dimension_semantics = [#tpu.dimension_semantics<parallel>], iteration_bounds = array<i64: 1>, scalar_prefetch = 0 : i64, scratch_operands = 0 : i64, tpu.core_type = #tpu.core_type<tc>, window_params = [{transform_indices = @transform_0, window_bounds = array<i64: 16, 32>}, {pipeline_mode = #tpu.pipeline_mode<synchronous>, transform_indices = @transform_1, window_bounds = array<i64: 32, 96>}, {pipeline_mode = #tpu.pipeline_mode<synchronous>, transform_indices = @transform_2, window_bounds = array<i64: 96, 14>}, {pipeline_mode = #tpu.pipeline_mode<synchronous>, transform_indices = @transform_3, window_bounds = array<i64: 7, 32>}, {pipeline_mode = #tpu.pipeline_mode<synchronous>, transform_indices = @transform_4, window_bounds = array<i64: 32, 31>}, {pipeline_mode = #tpu.pipeline_mode<synchronous>, transform_indices = @transform_5, window_bounds = array<i64: 32, 16>}, {pipeline_mode = #tpu.pipeline_mode<synchronous>, transform_indices = @transform_6, window_bounds = array<i64: 17, 7>}, {pipeline_mode = #tpu.pipeline_mode<synchronous>, transform_indices = @transform_7, window_bounds = array<i64: 3, 32>}, {transform_indices = @transform_8, window_bounds = array<i64: 16, 128>}]} {
    %c0 = arith.constant 0 : index
    %c0_0 = arith.constant 0 : index
    %0 = vector.load %arg1[%c0, %c0_0] : memref<16x32xbf16, #tpu.memory_space<vmem>>, vector<16x32xbf16>
    %1 = arith.extf %0 : vector<16x32xbf16> to vector<16x32xf32>
    %c0_1 = arith.constant 0 : index
    %c0_2 = arith.constant 0 : index
    %2 = vector.load %arg8[%c0_1, %c0_2] : memref<3x32xf32, #tpu.memory_space<vmem>>, vector<3x32xf32>
    %3 = vector.extract_strided_slice %2 {offsets = [0, 0], sizes = [1, 32], strides = [1, 1]} : vector<3x32xf32> to vector<1x32xf32>
    %4 = vector.extract_strided_slice %2 {offsets = [1, 0], sizes = [1, 32], strides = [1, 1]} : vector<3x32xf32> to vector<1x32xf32>
    %5 = vector.extract_strided_slice %2 {offsets = [2, 0], sizes = [1, 32], strides = [1, 1]} : vector<3x32xf32> to vector<1x32xf32>
    %c0_3 = arith.constant 0 : index
    %c0_4 = arith.constant 0 : index
    %6 = vector.load %arg7[%c0_3, %c0_4] : memref<17x7xf32, #tpu.memory_space<vmem>>, vector<17x7xf32>
    %7 = vector.extract_strided_slice %6 {offsets = [0, 0], sizes = [1, 7], strides = [1, 1]} : vector<17x7xf32> to vector<1x7xf32>
    %8 = vector.extract_strided_slice %6 {offsets = [1, 0], sizes = [1, 7], strides = [1, 1]} : vector<17x7xf32> to vector<1x7xf32>
    %9 = vector.extract_strided_slice %6 {offsets = [2, 0], sizes = [1, 7], strides = [1, 1]} : vector<17x7xf32> to vector<1x7xf32>
    %10 = vector.extract_strided_slice %6 {offsets = [3, 0], sizes = [1, 7], strides = [1, 1]} : vector<17x7xf32> to vector<1x7xf32>
    %11 = vector.extract_strided_slice %6 {offsets = [4, 0], sizes = [1, 7], strides = [1, 1]} : vector<17x7xf32> to vector<1x7xf32>
    %12 = vector.extract_strided_slice %6 {offsets = [5, 0], sizes = [1, 7], strides = [1, 1]} : vector<17x7xf32> to vector<1x7xf32>
    %13 = vector.extract_strided_slice %6 {offsets = [6, 0], sizes = [1, 7], strides = [1, 1]} : vector<17x7xf32> to vector<1x7xf32>
    %14 = vector.extract_strided_slice %6 {offsets = [7, 0], sizes = [1, 7], strides = [1, 1]} : vector<17x7xf32> to vector<1x7xf32>
    %15 = vector.extract_strided_slice %6 {offsets = [8, 0], sizes = [1, 7], strides = [1, 1]} : vector<17x7xf32> to vector<1x7xf32>
    %16 = vector.extract_strided_slice %6 {offsets = [9, 0], sizes = [1, 7], strides = [1, 1]} : vector<17x7xf32> to vector<1x7xf32>
    %17 = vector.extract_strided_slice %6 {offsets = [10, 0], sizes = [1, 7], strides = [1, 1]} : vector<17x7xf32> to vector<1x7xf32>
    %18 = vector.extract_strided_slice %6 {offsets = [11, 0], sizes = [1, 7], strides = [1, 1]} : vector<17x7xf32> to vector<1x7xf32>
    %19 = vector.extract_strided_slice %6 {offsets = [12, 0], sizes = [1, 7], strides = [1, 1]} : vector<17x7xf32> to vector<1x7xf32>
    %20 = vector.extract_strided_slice %6 {offsets = [13, 0], sizes = [1, 7], strides = [1, 1]} : vector<17x7xf32> to vector<1x7xf32>
    %21 = vector.extract_strided_slice %6 {offsets = [14, 0], sizes = [1, 7], strides = [1, 1]} : vector<17x7xf32> to vector<1x7xf32>
    %22 = vector.extract_strided_slice %6 {offsets = [15, 0], sizes = [1, 7], strides = [1, 1]} : vector<17x7xf32> to vector<1x7xf32>
    %23 = vector.extract_strided_slice %6 {offsets = [16, 0], sizes = [1, 7], strides = [1, 1]} : vector<17x7xf32> to vector<1x7xf32>
    %c0_5 = arith.constant 0 : index
    %c0_6 = arith.constant 0 : index
    %24 = vector.load %arg2[%c0_5, %c0_6] : memref<32x96xbf16, #tpu.memory_space<vmem>>, vector<32x96xbf16>
    %cst = arith.constant dense<0.000000e+00> : vector<16x96xf32>
    %25 = tpu.matmul %0, %24, %cst {dimension_numbers = #tpu.dot_dimension_numbers<[1], [0], [0], [1], [0, 0, 1, 1], [], []>} : vector<16x32xbf16>, vector<32x96xbf16>, vector<16x96xf32> -> vector<16x96xf32>
    %26 = vector.extract_strided_slice %25 {offsets = [0, 0], sizes = [16, 32], strides = [1, 1]} : vector<16x96xf32> to vector<16x32xf32>
    %27 = vector.extract_strided_slice %25 {offsets = [0, 32], sizes = [16, 32], strides = [1, 1]} : vector<16x96xf32> to vector<16x32xf32>
    %28 = vector.extract_strided_slice %25 {offsets = [0, 64], sizes = [16, 32], strides = [1, 1]} : vector<16x96xf32> to vector<16x32xf32>
    %c0_7 = arith.constant 0 : index
    %c0_8 = arith.constant 0 : index
    %29 = vector.load %arg3[%c0_7, %c0_8] : memref<96x14xf32, #tpu.memory_space<vmem>>, vector<96x14xf32>
    %cst_9 = arith.constant dense<0.000000e+00> : vector<16x14xf32>
    %30 = tpu.matmul %25, %29, %cst_9 {dimension_numbers = #tpu.dot_dimension_numbers<[1], [0], [0], [1], [0, 0, 1, 1], [], []>} : vector<16x96xf32>, vector<96x14xf32>, vector<16x14xf32> -> vector<16x14xf32>
    %31 = vector.extract_strided_slice %30 {offsets = [0, 0], sizes = [16, 7], strides = [1, 1]} : vector<16x14xf32> to vector<16x7xf32>
    %32 = vector.extract_strided_slice %30 {offsets = [0, 7], sizes = [16, 7], strides = [1, 1]} : vector<16x14xf32> to vector<16x7xf32>
    %33 = arith.mulf %26, %27 : vector<16x32xf32>
    %cst_10 = arith.constant dense<0.000000e+00> : vector<16xf32>
    %34 = vector.multi_reduction <add>, %33, %cst_10 [1] : vector<16x32xf32> to vector<16xf32>
    %35 = vector.shape_cast %34 : vector<16xf32> to vector<16x1xf32>
    %cst_11 = arith.constant dense<0xFF800000> : vector<16xf32>
    %36 = vector.multi_reduction <maximumf>, %31, %cst_11 [1] : vector<16x7xf32> to vector<16xf32>
    %37 = vector.shape_cast %36 : vector<16xf32> to vector<16x1xf32>
    %38 = arith.maximumf %35, %37 : vector<16x1xf32>
    %39 = arith.subf %35, %38 : vector<16x1xf32>
    %40 = math.exp %39 : vector<16x1xf32>
    %41 = vector.broadcast %38 : vector<16x1xf32> to vector<16x7xf32>
    %42 = arith.subf %31, %41 : vector<16x7xf32>
    %43 = math.exp %42 : vector<16x7xf32>
    %cst_12 = arith.constant dense<0.000000e+00> : vector<16xf32>
    %44 = vector.multi_reduction <add>, %43, %cst_12 [1] : vector<16x7xf32> to vector<16xf32>
    %45 = vector.shape_cast %44 : vector<16xf32> to vector<16x1xf32>
    %46 = arith.addf %40, %45 : vector<16x1xf32>
    %47 = tpu.reciprocal %46 {approx = true} : vector<16x1xf32> -> vector<16x1xf32>
    %48 = arith.mulf %46, %47 : vector<16x1xf32>
    %cst_13 = arith.constant 2.000000e+00 : f32
    %49 = vector.broadcast %cst_13 : f32 to vector<16x1xf32>
    %50 = arith.subf %49, %48 : vector<16x1xf32>
    %51 = arith.mulf %47, %50 : vector<16x1xf32>
    %52 = vector.broadcast %40 : vector<16x1xf32> to vector<16x32xf32>
    %53 = arith.mulf %52, %28 : vector<16x32xf32>
    %c0_14 = arith.constant 0 : index
    %c0_15 = arith.constant 0 : index
    %54 = vector.load %arg4[%c0_14, %c0_15] : memref<7x32xf32, #tpu.memory_space<vmem>>, vector<7x32xf32>
    %cst_16 = arith.constant dense<0.000000e+00> : vector<16x32xf32>
    %55 = tpu.matmul %43, %54, %cst_16 {dimension_numbers = #tpu.dot_dimension_numbers<[1], [0], [0], [1], [0, 0, 1, 1], [], []>} : vector<16x7xf32>, vector<7x32xf32>, vector<16x32xf32> -> vector<16x32xf32>
    %56 = arith.addf %53, %55 : vector<16x32xf32>
    %57 = vector.broadcast %51 : vector<16x1xf32> to vector<16x32xf32>
    %58 = arith.mulf %56, %57 : vector<16x32xf32>
    %59 = vector.broadcast %3 : vector<1x32xf32> to vector<16x32xf32>
    %60 = arith.addf %58, %59 : vector<16x32xf32>
    %61 = arith.addf %60, %1 : vector<16x32xf32>
    %cst_17 = arith.constant dense<0.000000e+00> : vector<16xf32>
    %62 = vector.multi_reduction <add>, %61, %cst_17 [1] : vector<16x32xf32> to vector<16xf32>
    %63 = vector.shape_cast %62 : vector<16xf32> to vector<16x1xf32>
    %cst_18 = arith.constant 3.200000e+01 : f32
    %64 = vector.broadcast %cst_18 : f32 to vector<16x1xf32>
    %65 = arith.divf %63, %64 : vector<16x1xf32>
    %66 = vector.broadcast %65 : vector<16x1xf32> to vector<16x32xf32>
    %67 = arith.subf %61, %66 : vector<16x32xf32>
    %68 = arith.mulf %67, %67 : vector<16x32xf32>
    %cst_19 = arith.constant dense<0.000000e+00> : vector<16xf32>
    %69 = vector.multi_reduction <add>, %68, %cst_19 [1] : vector<16x32xf32> to vector<16xf32>
    %70 = vector.shape_cast %69 : vector<16xf32> to vector<16x1xf32>
    %cst_20 = arith.constant 3.200000e+01 : f32
    %71 = vector.broadcast %cst_20 : f32 to vector<16x1xf32>
    %72 = arith.divf %70, %71 : vector<16x1xf32>
    %73 = vector.broadcast %65 : vector<16x1xf32> to vector<16x32xf32>
    %74 = arith.subf %61, %73 : vector<16x32xf32>
    %cst_21 = arith.constant 9.99999974E-6 : f32
    %75 = vector.broadcast %cst_21 : f32 to vector<16x1xf32>
    %76 = arith.addf %72, %75 : vector<16x1xf32>
    %77 = math.rsqrt %76 : vector<16x1xf32>
    %78 = vector.broadcast %77 : vector<16x1xf32> to vector<16x32xf32>
    %79 = arith.mulf %74, %78 : vector<16x32xf32>
    %80 = vector.broadcast %4 : vector<1x32xf32> to vector<16x32xf32>
    %81 = arith.mulf %79, %80 : vector<16x32xf32>
    %82 = vector.broadcast %5 : vector<1x32xf32> to vector<16x32xf32>
    %83 = arith.addf %81, %82 : vector<16x32xf32>
    %84 = arith.mulf %83, %83 : vector<16x32xf32>
    %cst_22 = arith.constant dense<0.000000e+00> : vector<16xf32>
    %85 = vector.multi_reduction <add>, %84, %cst_22 [1] : vector<16x32xf32> to vector<16xf32>
    %86 = vector.shape_cast %85 : vector<16xf32> to vector<16x1xf32>
    %87 = vector.broadcast %7 : vector<1x7xf32> to vector<16x7xf32>
    %88 = arith.maximumf %32, %87 : vector<16x7xf32>
    %89 = arith.subf %32, %88 : vector<16x7xf32>
    %90 = math.exp %89 : vector<16x7xf32>
    %91 = vector.broadcast %7 : vector<1x7xf32> to vector<16x7xf32>
    %92 = arith.subf %91, %88 : vector<16x7xf32>
    %93 = math.exp %92 : vector<16x7xf32>
    %94 = vector.broadcast %8 : vector<1x7xf32> to vector<16x7xf32>
    %95 = arith.mulf %93, %94 : vector<16x7xf32>
    %96 = arith.addf %90, %95 : vector<16x7xf32>
    %97 = tpu.reciprocal %96 {approx = true} : vector<16x7xf32> -> vector<16x7xf32>
    %98 = arith.mulf %96, %97 : vector<16x7xf32>
    %cst_23 = arith.constant 2.000000e+00 : f32
    %99 = vector.broadcast %cst_23 : f32 to vector<16x7xf32>
    %100 = arith.subf %99, %98 : vector<16x7xf32>
    %101 = arith.mulf %97, %100 : vector<16x7xf32>
    %102 = arith.mulf %90, %101 : vector<16x7xf32>
    %103 = arith.mulf %93, %101 : vector<16x7xf32>
    %c0_24 = arith.constant 0 : index
    %c0_25 = arith.constant 0 : index
    %104 = vector.load %arg5[%c0_24, %c0_25] : memref<32x31xf32, #tpu.memory_space<vmem>>, vector<32x31xf32>
    %cst_26 = arith.constant dense<0.000000e+00> : vector<16x31xf32>
    %105 = tpu.matmul %28, %104, %cst_26 {dimension_numbers = #tpu.dot_dimension_numbers<[1], [0], [0], [1], [0, 0, 1, 1], [], []>} : vector<16x32xf32>, vector<32x31xf32>, vector<16x31xf32> -> vector<16x31xf32>
    %106 = vector.extract_strided_slice %105 {offsets = [0, 0], sizes = [16, 7], strides = [1, 1]} : vector<16x31xf32> to vector<16x7xf32>
    %107 = vector.extract_strided_slice %105 {offsets = [0, 7], sizes = [16, 7], strides = [1, 1]} : vector<16x31xf32> to vector<16x7xf32>
    %108 = vector.extract_strided_slice %105 {offsets = [0, 14], sizes = [16, 7], strides = [1, 1]} : vector<16x31xf32> to vector<16x7xf32>
    %109 = vector.extract_strided_slice %105 {offsets = [0, 21], sizes = [16, 7], strides = [1, 1]} : vector<16x31xf32> to vector<16x7xf32>
    %110 = vector.extract_strided_slice %105 {offsets = [0, 28], sizes = [16, 1], strides = [1, 1]} : vector<16x31xf32> to vector<16x1xf32>
    %111 = vector.extract_strided_slice %105 {offsets = [0, 29], sizes = [16, 1], strides = [1, 1]} : vector<16x31xf32> to vector<16x1xf32>
    %112 = vector.extract_strided_slice %105 {offsets = [0, 30], sizes = [16, 1], strides = [1, 1]} : vector<16x31xf32> to vector<16x1xf32>
    %c0_27 = arith.constant 0 : index
    %c0_28 = arith.constant 0 : index
    %113 = vector.load %arg6[%c0_27, %c0_28] : memref<32x16xf32, #tpu.memory_space<vmem>>, vector<32x16xf32>
    %cst_29 = arith.constant dense<0.000000e+00> : vector<16x16xf32>
    %114 = tpu.matmul %83, %113, %cst_29 {dimension_numbers = #tpu.dot_dimension_numbers<[1], [0], [0], [1], [0, 0, 1, 1], [], []>} : vector<16x32xf32>, vector<32x16xf32>, vector<16x16xf32> -> vector<16x16xf32>
    %115 = vector.extract_strided_slice %114 {offsets = [0, 0], sizes = [16, 7], strides = [1, 1]} : vector<16x16xf32> to vector<16x7xf32>
    %116 = vector.extract_strided_slice %114 {offsets = [0, 7], sizes = [16, 7], strides = [1, 1]} : vector<16x16xf32> to vector<16x7xf32>
    %117 = vector.extract_strided_slice %114 {offsets = [0, 14], sizes = [16, 1], strides = [1, 1]} : vector<16x16xf32> to vector<16x1xf32>
    %118 = vector.extract_strided_slice %114 {offsets = [0, 15], sizes = [16, 1], strides = [1, 1]} : vector<16x16xf32> to vector<16x1xf32>
    %119 = vector.broadcast %4 : vector<1x32xf32> to vector<16x32xf32>
    %120 = arith.mulf %119, %28 : vector<16x32xf32>
    %121 = arith.mulf %28, %28 : vector<16x32xf32>
    %cst_30 = arith.constant dense<0.000000e+00> : vector<16xf32>
    %122 = vector.multi_reduction <add>, %121, %cst_30 [1] : vector<16x32xf32> to vector<16xf32>
    %123 = vector.shape_cast %122 : vector<16xf32> to vector<16x1xf32>
    %124 = arith.mulf %120, %120 : vector<16x32xf32>
    %cst_31 = arith.constant dense<0.000000e+00> : vector<16xf32>
    %125 = vector.multi_reduction <add>, %124, %cst_31 [1] : vector<16x32xf32> to vector<16xf32>
    %126 = vector.shape_cast %125 : vector<16xf32> to vector<16x1xf32>
    %127 = arith.mulf %83, %120 : vector<16x32xf32>
    %cst_32 = arith.constant dense<0.000000e+00> : vector<16xf32>
    %128 = vector.multi_reduction <add>, %127, %cst_32 [1] : vector<16x32xf32> to vector<16xf32>
    %129 = vector.shape_cast %128 : vector<16xf32> to vector<16x1xf32>
    %130 = arith.mulf %102, %102 : vector<16x7xf32>
    %131 = arith.mulf %103, %103 : vector<16x7xf32>
    %132 = arith.mulf %102, %103 : vector<16x7xf32>
    %133 = vector.broadcast %110 : vector<16x1xf32> to vector<16x7xf32>
    %134 = arith.mulf %102, %133 : vector<16x7xf32>
    %135 = vector.broadcast %9 : vector<1x7xf32> to vector<16x7xf32>
    %136 = arith.mulf %103, %135 : vector<16x7xf32>
    %137 = arith.addf %134, %136 : vector<16x7xf32>
    %138 = vector.broadcast %10 : vector<1x7xf32> to vector<16x7xf32>
    %139 = arith.addf %137, %138 : vector<16x7xf32>
    %140 = vector.broadcast %123 : vector<16x1xf32> to vector<16x7xf32>
    %141 = arith.mulf %130, %140 : vector<16x7xf32>
    %142 = vector.broadcast %11 : vector<1x7xf32> to vector<16x7xf32>
    %143 = arith.mulf %131, %142 : vector<16x7xf32>
    %144 = arith.addf %141, %143 : vector<16x7xf32>
    %145 = vector.broadcast %12 : vector<1x7xf32> to vector<16x7xf32>
    %146 = arith.addf %144, %145 : vector<16x7xf32>
    %147 = arith.mulf %132, %106 : vector<16x7xf32>
    %148 = arith.mulf %102, %107 : vector<16x7xf32>
    %149 = arith.addf %147, %148 : vector<16x7xf32>
    %150 = vector.broadcast %13 : vector<1x7xf32> to vector<16x7xf32>
    %151 = arith.mulf %103, %150 : vector<16x7xf32>
    %152 = arith.addf %149, %151 : vector<16x7xf32>
    %cst_33 = arith.constant 2.000000e+00 : f32
    %153 = vector.broadcast %cst_33 : f32 to vector<16x7xf32>
    %154 = arith.mulf %153, %152 : vector<16x7xf32>
    %155 = arith.addf %146, %154 : vector<16x7xf32>
    %cst_34 = arith.constant 3.125000e-02 : f32
    %156 = vector.broadcast %cst_34 : f32 to vector<16x7xf32>
    %157 = arith.mulf %155, %156 : vector<16x7xf32>
    %158 = arith.mulf %139, %139 : vector<16x7xf32>
    %159 = arith.subf %157, %158 : vector<16x7xf32>
    %cst_35 = arith.constant 0.000000e+00 : f32
    %160 = vector.broadcast %cst_35 : f32 to vector<16x7xf32>
    %161 = arith.maximumf %159, %160 : vector<16x7xf32>
    %cst_36 = arith.constant 9.99999974E-6 : f32
    %162 = vector.broadcast %cst_36 : f32 to vector<16x7xf32>
    %163 = arith.addf %161, %162 : vector<16x7xf32>
    %164 = math.rsqrt %163 : vector<16x7xf32>
    %165 = vector.broadcast %129 : vector<16x1xf32> to vector<16x7xf32>
    %166 = arith.mulf %102, %165 : vector<16x7xf32>
    %167 = arith.mulf %103, %115 : vector<16x7xf32>
    %168 = arith.addf %166, %167 : vector<16x7xf32>
    %169 = arith.addf %168, %116 : vector<16x7xf32>
    %170 = vector.broadcast %117 : vector<16x1xf32> to vector<16x7xf32>
    %171 = arith.mulf %139, %170 : vector<16x7xf32>
    %172 = arith.subf %169, %171 : vector<16x7xf32>
    %173 = arith.mulf %164, %172 : vector<16x7xf32>
    %174 = vector.broadcast %118 : vector<16x1xf32> to vector<16x7xf32>
    %175 = arith.addf %173, %174 : vector<16x7xf32>
    %176 = vector.broadcast %126 : vector<16x1xf32> to vector<16x7xf32>
    %177 = arith.mulf %130, %176 : vector<16x7xf32>
    %178 = vector.broadcast %14 : vector<1x7xf32> to vector<16x7xf32>
    %179 = arith.mulf %131, %178 : vector<16x7xf32>
    %180 = arith.addf %177, %179 : vector<16x7xf32>
    %181 = vector.broadcast %15 : vector<1x7xf32> to vector<16x7xf32>
    %182 = arith.addf %180, %181 : vector<16x7xf32>
    %183 = arith.mulf %132, %108 : vector<16x7xf32>
    %184 = arith.mulf %102, %109 : vector<16x7xf32>
    %185 = arith.addf %183, %184 : vector<16x7xf32>
    %186 = vector.broadcast %16 : vector<1x7xf32> to vector<16x7xf32>
    %187 = arith.mulf %103, %186 : vector<16x7xf32>
    %188 = arith.addf %185, %187 : vector<16x7xf32>
    %cst_37 = arith.constant 2.000000e+00 : f32
    %189 = vector.broadcast %cst_37 : f32 to vector<16x7xf32>
    %190 = arith.mulf %189, %188 : vector<16x7xf32>
    %191 = arith.addf %182, %190 : vector<16x7xf32>
    %192 = vector.broadcast %111 : vector<16x1xf32> to vector<16x7xf32>
    %193 = arith.mulf %102, %192 : vector<16x7xf32>
    %194 = vector.broadcast %17 : vector<1x7xf32> to vector<16x7xf32>
    %195 = arith.mulf %103, %194 : vector<16x7xf32>
    %196 = arith.addf %193, %195 : vector<16x7xf32>
    %197 = vector.broadcast %18 : vector<1x7xf32> to vector<16x7xf32>
    %198 = arith.addf %196, %197 : vector<16x7xf32>
    %199 = vector.broadcast %112 : vector<16x1xf32> to vector<16x7xf32>
    %200 = arith.mulf %102, %199 : vector<16x7xf32>
    %201 = vector.broadcast %19 : vector<1x7xf32> to vector<16x7xf32>
    %202 = arith.mulf %103, %201 : vector<16x7xf32>
    %203 = arith.addf %200, %202 : vector<16x7xf32>
    %204 = vector.broadcast %20 : vector<1x7xf32> to vector<16x7xf32>
    %205 = arith.addf %203, %204 : vector<16x7xf32>
    %206 = arith.mulf %164, %164 : vector<16x7xf32>
    %cst_38 = arith.constant 2.000000e+00 : f32
    %207 = vector.broadcast %cst_38 : f32 to vector<16x7xf32>
    %208 = arith.mulf %207, %139 : vector<16x7xf32>
    %209 = arith.mulf %208, %198 : vector<16x7xf32>
    %210 = arith.subf %191, %209 : vector<16x7xf32>
    %211 = arith.mulf %139, %139 : vector<16x7xf32>
    %212 = vector.broadcast %21 : vector<1x7xf32> to vector<16x7xf32>
    %213 = arith.mulf %211, %212 : vector<16x7xf32>
    %214 = arith.addf %210, %213 : vector<16x7xf32>
    %215 = arith.mulf %206, %214 : vector<16x7xf32>
    %cst_39 = arith.constant 2.000000e+00 : f32
    %216 = vector.broadcast %cst_39 : f32 to vector<16x7xf32>
    %217 = arith.mulf %216, %164 : vector<16x7xf32>
    %218 = vector.broadcast %22 : vector<1x7xf32> to vector<16x7xf32>
    %219 = arith.mulf %139, %218 : vector<16x7xf32>
    %220 = arith.subf %205, %219 : vector<16x7xf32>
    %221 = arith.mulf %217, %220 : vector<16x7xf32>
    %222 = arith.addf %215, %221 : vector<16x7xf32>
    %223 = vector.broadcast %23 : vector<1x7xf32> to vector<16x7xf32>
    %224 = arith.addf %222, %223 : vector<16x7xf32>
    %225 = vector.broadcast %86 : vector<16x1xf32> to vector<16x7xf32>
    %226 = arith.mulf %225, %224 : vector<16x7xf32>
    %cst_40 = arith.constant 1.000000e-16 : f32
    %227 = vector.broadcast %cst_40 : f32 to vector<16x7xf32>
    %228 = arith.maximumf %226, %227 : vector<16x7xf32>
    %229 = math.rsqrt %228 : vector<16x7xf32>
    %230 = arith.mulf %175, %229 : vector<16x7xf32>
    %cst_41 = arith.constant 0.000000e+00 : f32
    %231 = vector.broadcast %cst_41 : f32 to vector<16x121xf32>
    %232 = tpu.concatenate %230, %231 in 1 : vector<16x7xf32>, vector<16x121xf32> -> vector<16x128xf32>
    %c0_42 = arith.constant 0 : index
    %c0_43 = arith.constant 0 : index
    %233 = vector.load %arg9[%c0_42, %c0_43] : memref<16x128xf32, #tpu.memory_space<vmem>>, vector<16x128xf32>
    tpu.vector_store %arg9[%c0_42, %c0_43], %232 {strides = array<i32>} : memref<16x128xf32, #tpu.memory_space<vmem>>, vector<16x128xf32>,
    return
  }
  func.func @transform_0(%arg0: i32) -> (i32, i32) {
    %c0_i32 = arith.constant 0 : i32
    %c0_i32_0 = arith.constant 0 : i32
    return %arg0, %c0_i32 : i32, i32
  }
  func.func @transform_1(%arg0: i32) -> (i32, i32) {
    %c0_i32 = arith.constant 0 : i32
    %c0_i32_0 = arith.constant 0 : i32
    %c0_i32_1 = arith.constant 0 : i32
    return %c0_i32, %c0_i32_0 : i32, i32
  }
  func.func @transform_2(%arg0: i32) -> (i32, i32) {
    %c0_i32 = arith.constant 0 : i32
    %c0_i32_0 = arith.constant 0 : i32
    %c0_i32_1 = arith.constant 0 : i32
    return %c0_i32, %c0_i32_0 : i32, i32
  }
  func.func @transform_3(%arg0: i32) -> (i32, i32) {
    %c0_i32 = arith.constant 0 : i32
    %c0_i32_0 = arith.constant 0 : i32
    %c0_i32_1 = arith.constant 0 : i32
    return %c0_i32, %c0_i32_0 : i32, i32
  }
  func.func @transform_4(%arg0: i32) -> (i32, i32) {
    %c0_i32 = arith.constant 0 : i32
    %c0_i32_0 = arith.constant 0 : i32
    %c0_i32_1 = arith.constant 0 : i32
    return %c0_i32, %c0_i32_0 : i32, i32
  }
  func.func @transform_5(%arg0: i32) -> (i32, i32) {
    %c0_i32 = arith.constant 0 : i32
    %c0_i32_0 = arith.constant 0 : i32
    %c0_i32_1 = arith.constant 0 : i32
    return %c0_i32, %c0_i32_0 : i32, i32
  }
  func.func @transform_6(%arg0: i32) -> (i32, i32) {
    %c0_i32 = arith.constant 0 : i32
    %c0_i32_0 = arith.constant 0 : i32
    %c0_i32_1 = arith.constant 0 : i32
    return %c0_i32, %c0_i32_0 : i32, i32
  }
  func.func @transform_7(%arg0: i32) -> (i32, i32) {
    %c0_i32 = arith.constant 0 : i32
    %c0_i32_0 = arith.constant 0 : i32
    %c0_i32_1 = arith.constant 0 : i32
    return %c0_i32, %c0_i32_0 : i32, i32
  }
  func.func @transform_8(%arg0: i32) -> (i32, i32) {
    %c0_i32 = arith.constant 0 : i32
    %c0_i32_0 = arith.constant 0 : i32
    return %arg0, %c0_i32 : i32, i32
  }
}

module attributes {stable_mosaic.version = 11 : i64} {
  func.func @adapter_kernel(%arg0: i32, %arg1: memref<16x32xbf16, #tpu.memory_space<vmem>>, %arg2: memref<32x96xbf16, #tpu.memory_space<vmem>>, %arg3: memref<96x14xf32, #tpu.memory_space<vmem>>, %arg4: memref<7x32xf32, #tpu.memory_space<vmem>>, %arg5: memref<32x31xf32, #tpu.memory_space<vmem>>, %arg6: memref<32x16xf32, #tpu.memory_space<vmem>>, %arg7: memref<17x7xf32, #tpu.memory_space<vmem>>, %arg8: memref<3x32xf32, #tpu.memory_space<vmem>>, %arg9: memref<16x128xf32, #tpu.memory_space<vmem>>) attributes {dimension_semantics = [#tpu.dimension_semantics<parallel>], iteration_bounds = array<i64: 1>, scalar_prefetch = 0 : i64, scratch_operands = 0 : i64, tpu.core_type = #tpu.core_type<tc>, window_params = [{transform_indices = @transform_0, window_bounds = array<i64: 16, 32>}, {pipeline_mode = #tpu.pipeline_mode<synchronous>, transform_indices = @transform_1, window_bounds = array<i64: 32, 96>}, {pipeline_mode = #tpu.pipeline_mode<synchronous>, transform_indices = @transform_2, window_bounds = array<i64: 96, 14>}, {pipeline_mode = #tpu.pipeline_mode<synchronous>, transform_indices = @transform_3, window_bounds = array<i64: 7, 32>}, {pipeline_mode = #tpu.pipeline_mode<synchronous>, transform_indices = @transform_4, window_bounds = array<i64: 32, 31>}, {pipeline_mode = #tpu.pipeline_mode<synchronous>, transform_indices = @transform_5, window_bounds = array<i64: 32, 16>}, {pipeline_mode = #tpu.pipeline_mode<synchronous>, transform_indices = @transform_6, window_bounds = array<i64: 17, 7>}, {pipeline_mode = #tpu.pipeline_mode<synchronous>, transform_indices = @transform_7, window_bounds = array<i64: 3, 32>}, {transform_indices = @transform_8, window_bounds = array<i64: 16, 128>}]} {
    %c0 = arith.constant 0 : index
    %c0_0 = arith.constant 0 : index
    %0 = vector.load %arg1[%c0, %c0_0] : memref<16x32xbf16, #tpu.memory_space<vmem>>, vector<16x32xbf16>
    %1 = arith.extf %0 : vector<16x32xbf16> to vector<16x32xf32>
    %c0_1 = arith.constant 0 : index
    %c0_2 = arith.constant 0 : index
    %2 = vector.load %arg8[%c0_1, %c0_2] : memref<3x32xf32, #tpu.memory_space<vmem>>, vector<3x32xf32>
    %3 = vector.extract_strided_slice %2 {offsets = [0, 0], sizes = [1, 32], strides = [1, 1]} : vector<3x32xf32> to vector<1x32xf32>
    %4 = vector.extract_strided_slice %2 {offsets = [1, 0], sizes = [1, 32], strides = [1, 1]} : vector<3x32xf32> to vector<1x32xf32>
    %5 = vector.extract_strided_slice %2 {offsets = [2, 0], sizes = [1, 32], strides = [1, 1]} : vector<3x32xf32> to vector<1x32xf32>
    %c0_3 = arith.constant 0 : index
    %c0_4 = arith.constant 0 : index
    %6 = vector.load %arg7[%c0_3, %c0_4] : memref<17x7xf32, #tpu.memory_space<vmem>>, vector<17x7xf32>
    %7 = vector.extract_strided_slice %6 {offsets = [0, 0], sizes = [1, 7], strides = [1, 1]} : vector<17x7xf32> to vector<1x7xf32>
    %8 = vector.extract_strided_slice %6 {offsets = [1, 0], sizes = [1, 7], strides = [1, 1]} : vector<17x7xf32> to vector<1x7xf32>
    %9 = vector.extract_strided_slice %6 {offsets = [2, 0], sizes = [1, 7], strides = [1, 1]} : vector<17x7xf32> to vector<1x7xf32>
    %10 = vector.extract_strided_slice %6 {offsets = [3, 0], sizes = [1, 7], strides = [1, 1]} : vector<17x7xf32> to vector<1x7xf32>
    %11 = vector.extract_strided_slice %6 {offsets = [4, 0], sizes = [1, 7], strides = [1, 1]} : vector<17x7xf32> to vector<1x7xf32>
    %12 = vector.extract_strided_slice %6 {offsets = [5, 0], sizes = [1, 7], strides = [1, 1]} : vector<17x7xf32> to vector<1x7xf32>
    %13 = vector.extract_strided_slice %6 {offsets = [6, 0], sizes = [1, 7], strides = [1, 1]} : vector<17x7xf32> to vector<1x7xf32>
    %14 = vector.extract_strided_slice %6 {offsets = [7, 0], sizes = [1, 7], strides = [1, 1]} : vector<17x7xf32> to vector<1x7xf32>
    %15 = vector.extract_strided_slice %6 {offsets = [8, 0], sizes = [1, 7], strides = [1, 1]} : vector<17x7xf32> to vector<1x7xf32>
    %16 = vector.extract_strided_slice %6 {offsets = [9, 0], sizes = [1, 7], strides = [1, 1]} : vector<17x7xf32> to vector<1x7xf32>
    %17 = vector.extract_strided_slice %6 {offsets = [10, 0], sizes = [1, 7], strides = [1, 1]} : vector<17x7xf32> to vector<1x7xf32>
    %18 = vector.extract_strided_slice %6 {offsets = [11, 0], sizes = [1, 7], strides = [1, 1]} : vector<17x7xf32> to vector<1x7xf32>
    %19 = vector.extract_strided_slice %6 {offsets = [12, 0], sizes = [1, 7], strides = [1, 1]} : vector<17x7xf32> to vector<1x7xf32>
    %20 = vector.extract_strided_slice %6 {offsets = [13, 0], sizes = [1, 7], strides = [1, 1]} : vector<17x7xf32> to vector<1x7xf32>
    %21 = vector.extract_strided_slice %6 {offsets = [14, 0], sizes = [1, 7], strides = [1, 1]} : vector<17x7xf32> to vector<1x7xf32>
    %22 = vector.extract_strided_slice %6 {offsets = [15, 0], sizes = [1, 7], strides = [1, 1]} : vector<17x7xf32> to vector<1x7xf32>
    %23 = vector.extract_strided_slice %6 {offsets = [16, 0], sizes = [1, 7], strides = [1, 1]} : vector<17x7xf32> to vector<1x7xf32>
    %c0_5 = arith.constant 0 : index
    %c0_6 = arith.constant 0 : index
    %24 = vector.load %arg2[%c0_5, %c0_6] : memref<32x96xbf16, #tpu.memory_space<vmem>>, vector<32x96xbf16>
    %cst = arith.constant dense<0.000000e+00> : vector<16x96xf32>
    %25 = tpu.matmul %0, %24, %cst {dimension_numbers = #tpu.dot_dimension_numbers<[1], [0], [0], [1], [0, 0, 1, 1], [], []>} : vector<16x32xbf16>, vector<32x96xbf16>, vector<16x96xf32> -> vector<16x96xf32>
    %26 = vector.extract_strided_slice %25 {offsets = [0, 0], sizes = [16, 32], strides = [1, 1]} : vector<16x96xf32> to vector<16x32xf32>
    %27 = vector.extract_strided_slice %25 {offsets = [0, 32], sizes = [16, 32], strides = [1, 1]} : vector<16x96xf32> to vector<16x32xf32>
    %28 = vector.extract_strided_slice %25 {offsets = [0, 64], sizes = [16, 32], strides = [1, 1]} : vector<16x96xf32> to vector<16x32xf32>
    %c0_7 = arith.constant 0 : index
    %c0_8 = arith.constant 0 : index
    %29 = vector.load %arg3[%c0_7, %c0_8] : memref<96x14xf32, #tpu.memory_space<vmem>>, vector<96x14xf32>
    %cst_9 = arith.constant dense<0.000000e+00> : vector<16x14xf32>
    %30 = tpu.matmul %25, %29, %cst_9 {dimension_numbers = #tpu.dot_dimension_numbers<[1], [0], [0], [1], [0, 0, 1, 1], [], []>} : vector<16x96xf32>, vector<96x14xf32>, vector<16x14xf32> -> vector<16x14xf32>
    %31 = vector.extract_strided_slice %30 {offsets = [0, 0], sizes = [16, 7], strides = [1, 1]} : vector<16x14xf32> to vector<16x7xf32>
    %32 = vector.extract_strided_slice %30 {offsets = [0, 7], sizes = [16, 7], strides = [1, 1]} : vector<16x14xf32> to vector<16x7xf32>
    %33 = arith.mulf %26, %27 : vector<16x32xf32>
    %cst_10 = arith.constant dense<0.000000e+00> : vector<16xf32>
    %34 = vector.multi_reduction <add>, %33, %cst_10 [1] : vector<16x32xf32> to vector<16xf32>
    %35 = vector.shape_cast %34 : vector<16xf32> to vector<16x1xf32>
    %cst_11 = arith.constant dense<0xFF800000> : vector<16xf32>
    %36 = vector.multi_reduction <maximumf>, %31, %cst_11 [1] : vector<16x7xf32> to vector<16xf32>
    %37 = vector.shape_cast %36 : vector<16xf32> to vector<16x1xf32>
    %38 = arith.maximumf %35, %37 : vector<16x1xf32>
    %39 = arith.subf %35, %38 : vector<16x1xf32>
    %40 = math.exp %39 : vector<16x1xf32>
    %41 = vector.broadcast %38 : vector<16x1xf32> to vector<16x7xf32>
    %42 = arith.subf %31, %41 : vector<16x7xf32>
    %43 = math.exp %42 : vector<16x7xf32>
    %cst_12 = arith.constant dense<0.000000e+00> : vector<16xf32>
    %44 = vector.multi_reduction <add>, %43, %cst_12 [1] : vector<16x7xf32> to vector<16xf32>
    %45 = vector.shape_cast %44 : vector<16xf32> to vector<16x1xf32>
    %46 = arith.addf %40, %45 : vector<16x1xf32>
    %47 = tpu.reciprocal %46 {approx = true} : vector<16x1xf32> -> vector<16x1xf32>
    %48 = arith.mulf %46, %47 : vector<16x1xf32>
    %cst_13 = arith.constant 2.000000e+00 : f32
    %49 = vector.broadcast %cst_13 : f32 to vector<16x1xf32>
    %50 = arith.subf %49, %48 : vector<16x1xf32>
    %51 = arith.mulf %47, %50 : vector<16x1xf32>
    %52 = vector.broadcast %40 : vector<16x1xf32> to vector<16x32xf32>
    %53 = arith.mulf %52, %28 : vector<16x32xf32>
    %c0_14 = arith.constant 0 : index
    %c0_15 = arith.constant 0 : index
    %54 = vector.load %arg4[%c0_14, %c0_15] : memref<7x32xf32, #tpu.memory_space<vmem>>, vector<7x32xf32>
    %cst_16 = arith.constant dense<0.000000e+00> : vector<16x32xf32>
    %55 = tpu.matmul %43, %54, %cst_16 {dimension_numbers = #tpu.dot_dimension_numbers<[1], [0], [0], [1], [0, 0, 1, 1], [], []>} : vector<16x7xf32>, vector<7x32xf32>, vector<16x32xf32> -> vector<16x32xf32>
    %56 = arith.addf %53, %55 : vector<16x32xf32>
    %57 = vector.broadcast %51 : vector<16x1xf32> to vector<16x32xf32>
    %58 = arith.mulf %56, %57 : vector<16x32xf32>
    %59 = vector.broadcast %3 : vector<1x32xf32> to vector<16x32xf32>
    %60 = arith.addf %58, %59 : vector<16x32xf32>
    %61 = arith.addf %60, %1 : vector<16x32xf32>
    %cst_17 = arith.constant dense<0.000000e+00> : vector<16xf32>
    %62 = vector.multi_reduction <add>, %61, %cst_17 [1] : vector<16x32xf32> to vector<16xf32>
    %63 = vector.shape_cast %62 : vector<16xf32> to vector<16x1xf32>
    %cst_18 = arith.constant 3.200000e+01 : f32
    %64 = vector.broadcast %cst_18 : f32 to vector<16x1xf32>
    %65 = arith.divf %63, %64 : vector<16x1xf32>
    %66 = vector.broadcast %65 : vector<16x1xf32> to vector<16x32xf32>
    %67 = arith.subf %61, %66 : vector<16x32xf32>
    %68 = arith.mulf %67, %67 : vector<16x32xf32>
    %cst_19 = arith.constant dense<0.000000e+00> : vector<16xf32>
    %69 = vector.multi_reduction <add>, %68, %cst_19 [1] : vector<16x32xf32> to vector<16xf32>
    %70 = vector.shape_cast %69 : vector<16xf32> to vector<16x1xf32>
    %cst_20 = arith.constant 3.200000e+01 : f32
    %71 = vector.broadcast %cst_20 : f32 to vector<16x1xf32>
    %72 = arith.divf %70, %71 : vector<16x1xf32>
    %73 = vector.broadcast %65 : vector<16x1xf32> to vector<16x32xf32>
    %74 = arith.subf %61, %73 : vector<16x32xf32>
    %cst_21 = arith.constant 9.99999974E-6 : f32
    %75 = vector.broadcast %cst_21 : f32 to vector<16x1xf32>
    %76 = arith.addf %72, %75 : vector<16x1xf32>
    %77 = math.rsqrt %76 : vector<16x1xf32>
    %78 = vector.broadcast %77 : vector<16x1xf32> to vector<16x32xf32>
    %79 = arith.mulf %74, %78 : vector<16x32xf32>
    %80 = vector.broadcast %4 : vector<1x32xf32> to vector<16x32xf32>
    %81 = arith.mulf %79, %80 : vector<16x32xf32>
    %82 = vector.broadcast %5 : vector<1x32xf32> to vector<16x32xf32>
    %83 = arith.addf %81, %82 : vector<16x32xf32>
    %84 = arith.mulf %83, %83 : vector<16x32xf32>
    %cst_22 = arith.constant dense<0.000000e+00> : vector<16xf32>
    %85 = vector.multi_reduction <add>, %84, %cst_22 [1] : vector<16x32xf32> to vector<16xf32>
    %86 = vector.shape_cast %85 : vector<16xf32> to vector<16x1xf32>
    %87 = vector.broadcast %7 : vector<1x7xf32> to vector<16x7xf32>
    %88 = arith.maximumf %32, %87 : vector<16x7xf32>
    %89 = arith.subf %32, %88 : vector<16x7xf32>
    %90 = math.exp %89 : vector<16x7xf32>
    %91 = vector.broadcast %7 : vector<1x7xf32> to vector<16x7xf32>
    %92 = arith.subf %91, %88 : vector<16x7xf32>
    %93 = math.exp %92 : vector<16x7xf32>
    %94 = vector.broadcast %8 : vector<1x7xf32> to vector<16x7xf32>
    %95 = arith.mulf %93, %94 : vector<16x7xf32>
    %96 = arith.addf %90, %95 : vector<16x7xf32>
    %97 = tpu.reciprocal %96 {approx = true} : vector<16x7xf32> -> vector<16x7xf32>
    %98 = arith.mulf %96, %97 : vector<16x7xf32>
    %cst_23 = arith.constant 2.000000e+00 : f32
    %99 = vector.broadcast %cst_23 : f32 to vector<16x7xf32>
    %100 = arith.subf %99, %98 : vector<16x7xf32>
    %101 = arith.mulf %97, %100 : vector<16x7xf32>
    %102 = arith.mulf %90, %101 : vector<16x7xf32>
    %103 = arith.mulf %93, %101 : vector<16x7xf32>
    %c0_24 = arith.constant 0 : index
    %c0_25 = arith.constant 0 : index
    %104 = vector.load %arg5[%c0_24, %c0_25] : memref<32x31xf32, #tpu.memory_space<vmem>>, vector<32x31xf32>
    %cst_26 = arith.constant dense<0.000000e+00> : vector<16x31xf32>
    %105 = tpu.matmul %28, %104, %cst_26 {dimension_numbers = #tpu.dot_dimension_numbers<[1], [0], [0], [1], [0, 0, 1, 1], [], []>} : vector<16x32xf32>, vector<32x31xf32>, vector<16x31xf32> -> vector<16x31xf32>
    %106 = vector.extract_strided_slice %105 {offsets = [0, 0], sizes = [16, 7], strides = [1, 1]} : vector<16x31xf32> to vector<16x7xf32>
    %107 = vector.extract_strided_slice %105 {offsets = [0, 7], sizes = [16, 7], strides = [1, 1]} : vector<16x31xf32> to vector<16x7xf32>
    %108 = vector.extract_strided_slice %105 {offsets = [0, 14], sizes = [16, 7], strides = [1, 1]} : vector<16x31xf32> to vector<16x7xf32>
    %109 = vector.extract_strided_slice %105 {offsets = [0, 21], sizes = [16, 7], strides = [1, 1]} : vector<16x31xf32> to vector<16x7xf32>
    %110 = vector.extract_strided_slice %105 {offsets = [0, 28], sizes = [16, 1], strides = [1, 1]} : vector<16x31xf32> to vector<16x1xf32>
    %111 = vector.extract_strided_slice %105 {offsets = [0, 29], sizes = [16, 1], strides = [1, 1]} : vector<16x31xf32> to vector<16x1xf32>
    %112 = vector.extract_strided_slice %105 {offsets = [0, 30], sizes = [16, 1], strides = [1, 1]} : vector<16x31xf32> to vector<16x1xf32>
    %c0_27 = arith.constant 0 : index
    %c0_28 = arith.constant 0 : index
    %113 = vector.load %arg6[%c0_27, %c0_28] : memref<32x16xf32, #tpu.memory_space<vmem>>, vector<32x16xf32>
    %cst_29 = arith.constant dense<0.000000e+00> : vector<16x16xf32>
    %114 = tpu.matmul %83, %113, %cst_29 {dimension_numbers = #tpu.dot_dimension_numbers<[1], [0], [0], [1], [0, 0, 1, 1], [], []>} : vector<16x32xf32>, vector<32x16xf32>, vector<16x16xf32> -> vector<16x16xf32>
    %115 = vector.extract_strided_slice %114 {offsets = [0, 0], sizes = [16, 7], strides = [1, 1]} : vector<16x16xf32> to vector<16x7xf32>
    %116 = vector.extract_strided_slice %114 {offsets = [0, 7], sizes = [16, 7], strides = [1, 1]} : vector<16x16xf32> to vector<16x7xf32>
    %117 = vector.extract_strided_slice %114 {offsets = [0, 14], sizes = [16, 1], strides = [1, 1]} : vector<16x16xf32> to vector<16x1xf32>
    %118 = vector.extract_strided_slice %114 {offsets = [0, 15], sizes = [16, 1], strides = [1, 1]} : vector<16x16xf32> to vector<16x1xf32>
    %119 = vector.broadcast %4 : vector<1x32xf32> to vector<16x32xf32>
    %120 = arith.mulf %119, %28 : vector<16x32xf32>
    %121 = arith.mulf %28, %28 : vector<16x32xf32>
    %cst_30 = arith.constant dense<0.000000e+00> : vector<16xf32>
    %122 = vector.multi_reduction <add>, %121, %cst_30 [1] : vector<16x32xf32> to vector<16xf32>
    %123 = vector.shape_cast %122 : vector<16xf32> to vector<16x1xf32>
    %124 = arith.mulf %120, %120 : vector<16x32xf32>
    %cst_31 = arith.constant dense<0.000000e+00> : vector<16xf32>
    %125 = vector.multi_reduction <add>, %124, %cst_31 [1] : vector<16x32xf32> to vector<16xf32>
    %126 = vector.shape_cast %125 : vector<16xf32> to vector<16x1xf32>
    %127 = arith.mulf %83, %120 : vector<16x32xf32>
    %cst_32 = arith.constant dense<0.000000e+00> : vector<16xf32>
    %128 = vector.multi_reduction <add>, %127, %cst_32 [1] : vector<16x32xf32> to vector<16xf32>
    %129 = vector.shape_cast %128 : vector<16xf32> to vector<16x1xf32>
    %130 = arith.mulf %102, %102 : vector<16x7xf32>
    %131 = arith.mulf %103, %103 : vector<16x7xf32>
    %132 = arith.mulf %102, %103 : vector<16x7xf32>
    %133 = vector.broadcast %110 : vector<16x1xf32> to vector<16x7xf32>
    %134 = arith.mulf %102, %133 : vector<16x7xf32>
    %135 = vector.broadcast %9 : vector<1x7xf32> to vector<16x7xf32>
    %136 = arith.mulf %103, %135 : vector<16x7xf32>
    %137 = arith.addf %134, %136 : vector<16x7xf32>
    %138 = vector.broadcast %10 : vector<1x7xf32> to vector<16x7xf32>
    %139 = arith.addf %137, %138 : vector<16x7xf32>
    %140 = vector.broadcast %123 : vector<16x1xf32> to vector<16x7xf32>
    %141 = arith.mulf %130, %140 : vector<16x7xf32>
    %142 = vector.broadcast %11 : vector<1x7xf32> to vector<16x7xf32>
    %143 = arith.mulf %131, %142 : vector<16x7xf32>
    %144 = arith.addf %141, %143 : vector<16x7xf32>
    %145 = vector.broadcast %12 : vector<1x7xf32> to vector<16x7xf32>
    %146 = arith.addf %144, %145 : vector<16x7xf32>
    %147 = arith.mulf %132, %106 : vector<16x7xf32>
    %148 = arith.mulf %102, %107 : vector<16x7xf32>
    %149 = arith.addf %147, %148 : vector<16x7xf32>
    %150 = vector.broadcast %13 : vector<1x7xf32> to vector<16x7xf32>
    %151 = arith.mulf %103, %150 : vector<16x7xf32>
    %152 = arith.addf %149, %151 : vector<16x7xf32>
    %cst_33 = arith.constant 2.000000e+00 : f32
    %153 = vector.broadcast %cst_33 : f32 to vector<16x7xf32>
    %154 = arith.mulf %153, %152 : vector<16x7xf32>
    %155 = arith.addf %146, %154 : vector<16x7xf32>
    %cst_34 = arith.constant 3.125000e-02 : f32
    %156 = vector.broadcast %cst_34 : f32 to vector<16x7xf32>
    %157 = arith.mulf %155, %156 : vector<16x7xf32>
    %158 = arith.mulf %139, %139 : vector<16x7xf32>
    %159 = arith.subf %157, %158 : vector<16x7xf32>
    %cst_35 = arith.constant 0.000000e+00 : f32
    %160 = vector.broadcast %cst_35 : f32 to vector<16x7xf32>
    %161 = arith.maximumf %159, %160 : vector<16x7xf32>
    %cst_36 = arith.constant 9.99999974E-6 : f32
    %162 = vector.broadcast %cst_36 : f32 to vector<16x7xf32>
    %163 = arith.addf %161, %162 : vector<16x7xf32>
    %164 = math.rsqrt %163 : vector<16x7xf32>
    %165 = vector.broadcast %129 : vector<16x1xf32> to vector<16x7xf32>
    %166 = arith.mulf %102, %165 : vector<16x7xf32>
    %167 = arith.mulf %103, %115 : vector<16x7xf32>
    %168 = arith.addf %166, %167 : vector<16x7xf32>
    %169 = arith.addf %168, %116 : vector<16x7xf32>
    %170 = vector.broadcast %117 : vector<16x1xf32> to vector<16x7xf32>
    %171 = arith.mulf %139, %170 : vector<16x7xf32>
    %172 = arith.subf %169, %171 : vector<16x7xf32>
    %173 = arith.mulf %164, %172 : vector<16x7xf32>
    %174 = vector.broadcast %118 : vector<16x1xf32> to vector<16x7xf32>
    %175 = arith.addf %173, %174 : vector<16x7xf32>
    %176 = vector.broadcast %126 : vector<16x1xf32> to vector<16x7xf32>
    %177 = arith.mulf %130, %176 : vector<16x7xf32>
    %178 = vector.broadcast %14 : vector<1x7xf32> to vector<16x7xf32>
    %179 = arith.mulf %131, %178 : vector<16x7xf32>
    %180 = arith.addf %177, %179 : vector<16x7xf32>
    %181 = vector.broadcast %15 : vector<1x7xf32> to vector<16x7xf32>
    %182 = arith.addf %180, %181 : vector<16x7xf32>
    %183 = arith.mulf %132, %108 : vector<16x7xf32>
    %184 = arith.mulf %102, %109 : vector<16x7xf32>
    %185 = arith.addf %183, %184 : vector<16x7xf32>
    %186 = vector.broadcast %16 : vector<1x7xf32> to vector<16x7xf32>
    %187 = arith.mulf %103, %186 : vector<16x7xf32>
    %188 = arith.addf %185, %187 : vector<16x7xf32>
    %cst_37 = arith.constant 2.000000e+00 : f32
    %189 = vector.broadcast %cst_37 : f32 to vector<16x7xf32>
    %190 = arith.mulf %189, %188 : vector<16x7xf32>
    %191 = arith.addf %182, %190 : vector<16x7xf32>
    %192 = vector.broadcast %111 : vector<16x1xf32> to vector<16x7xf32>
    %193 = arith.mulf %102, %192 : vector<16x7xf32>
    %194 = vector.broadcast %17 : vector<1x7xf32> to vector<16x7xf32>
    %195 = arith.mulf %103, %194 : vector<16x7xf32>
    %196 = arith.addf %193, %195 : vector<16x7xf32>
    %197 = vector.broadcast %18 : vector<1x7xf32> to vector<16x7xf32>
    %198 = arith.addf %196, %197 : vector<16x7xf32>
    %199 = vector.broadcast %112 : vector<16x1xf32> to vector<16x7xf32>
    %200 = arith.mulf %102, %199 : vector<16x7xf32>
    %201 = vector.broadcast %19 : vector<1x7xf32> to vector<16x7xf32>
    %202 = arith.mulf %103, %201 : vector<16x7xf32>
    %203 = arith.addf %200, %202 : vector<16x7xf32>
    %204 = vector.broadcast %20 : vector<1x7xf32> to vector<16x7xf32>
    %205 = arith.addf %203, %204 : vector<16x7xf32>
    %206 = arith.mulf %164, %164 : vector<16x7xf32>
    %cst_38 = arith.constant 2.000000e+00 : f32
    %207 = vector.broadcast %cst_38 : f32 to vector<16x7xf32>
    %208 = arith.mulf %207, %139 : vector<16x7xf32>
    %209 = arith.mulf %208, %198 : vector<16x7xf32>
    %210 = arith.subf %191, %209 : vector<16x7xf32>
    %211 = arith.mulf %139, %139 : vector<16x7xf32>
    %212 = vector.broadcast %21 : vector<1x7xf32> to vector<16x7xf32>
    %213 = arith.mulf %211, %212 : vector<16x7xf32>
    %214 = arith.addf %210, %213 : vector<16x7xf32>
    %215 = arith.mulf %206, %214 : vector<16x7xf32>
    %cst_39 = arith.constant 2.000000e+00 : f32
    %216 = vector.broadcast %cst_39 : f32 to vector<16x7xf32>
    %217 = arith.mulf %216, %164 : vector<16x7xf32>
    %218 = vector.broadcast %22 : vector<1x7xf32> to vector<16x7xf32>
    %219 = arith.mulf %139, %218 : vector<16x7xf32>
    %220 = arith.subf %205, %219 : vector<16x7xf32>
    %221 = arith.mulf %217, %220 : vector<16x7xf32>
    %222 = arith.addf %215, %221 : vector<16x7xf32>
    %223 = vector.broadcast %23 : vector<1x7xf32> to vector<16x7xf32>
    %224 = arith.addf %222, %223 : vector<16x7xf32>
    %225 = vector.broadcast %86 : vector<16x1xf32> to vector<16x7xf32>
    %226 = arith.mulf %225, %224 : vector<16x7xf32>
    %cst_40 = arith.constant 1.000000e-16 : f32
    %227 = vector.broadcast %cst_40 : f32 to vector<16x7xf32>
    %228 = arith.maximumf %226, %227 : vector<16x7xf32>
    %229 = math.rsqrt %228 : vector<16x7xf32>
    %230 = arith.mulf %175, %229 : vector<16x7xf32>
    %cst_41 = arith.constant 0.000000e+00 : f32
    %231 = vector.broadcast %cst_41 : f32 to vector<16x121xf32>
    %232 = tpu.concatenate %230, %231 in 1 : vector<16x7xf32>, vector<16x121xf32> -> vector<16x128xf32>
    %c0_42 = arith.constant 0 : index
    %c0_43 = arith.constant 0 : index
    %233 = vector.load %arg9[%c0_42, %c0_43] : memref<16x128xf32, #tpu.memory_space<vmem>>, vector<16x128xf32>
    tpu.vector_store %arg9[%c0_42, %c0_43], %232 {strides = array<i32>} : memref<16x128xf32, #tpu.memory_space<vmem>>, vector<16x128xf32>,
    return
  }
  func.func @transform_0(%arg0: i32) -> (i32, i32) {
    %c0_i32 = arith.constant 0 : i32
    %c0_i32_0 = arith.constant 0 : i32
    return %arg0, %c0_i32 : i32, i32
  }
  func.func @transform_1(%arg0: i32) -> (i32, i32) {
    %c0_i32 = arith.constant 0 : i32
    %c0_i32_0 = arith.constant 0 : i32
    %c0_i32_1 = arith.constant 0 : i32
    return %c0_i32, %c0_i32_0 : i32, i32
  }
  func.func @transform_2(%arg0: i32) -> (i32, i32) {
    %c0_i32 = arith.constant 0 : i32
    %c0_i32_0 = arith.constant 0 : i32
    %c0_i32_1 = arith.constant 0 : i32
    return %c0_i32, %c0_i32_0 : i32, i32
  }
  func.func @transform_3(%arg0: i32) -> (i32, i32) {
    %c0_i32 = arith.constant 0 : i32
    %c0_i32_0 = arith.constant 0 : i32
    %c0_i32_1 = arith.constant 0 : i32
    return %c0_i32, %c0_i32_0 : i32, i32
  }
  func.func @transform_4(%arg0: i32) -> (i32, i32) {
    %c0_i32 = arith.constant 0 : i32
    %c0_i32_0 = arith.constant 0 : i32
    %c0_i32_1 = arith.constant 0 : i32
    return %c0_i32, %c0_i32_0 : i32, i32
  }
  func.func @transform_5(%arg0: i32) -> (i32, i32) {
    %c0_i32 = arith.constant 0 : i32
    %c0_i32_0 = arith.constant 0 : i32
    %c0_i32_1 = arith.constant 0 : i32
    return %c0_i32, %c0_i32_0 : i32, i32
  }
  func.func @transform_6(%arg0: i32) -> (i32, i32) {
    %c0_i32 = arith.constant 0 : i32
    %c0_i32_0 = arith.constant 0 : i32
    %c0_i32_1 = arith.constant 0 : i32
    return %c0_i32, %c0_i32_0 : i32, i32
  }
  func.func @transform_7(%arg0: i32) -> (i32, i32) {
    %c0_i32 = arith.constant 0 : i32
    %c0_i32_0 = arith.constant 0 : i32
    %c0_i32_1 = arith.constant 0 : i32
    return %c0_i32, %c0_i32_0 : i32, i32
  }
  func.func @transform_8(%arg0: i32) -> (i32, i32) {
    %c0_i32 = arith.constant 0 : i32
    %c0_i32_0 = arith.constant 0 : i32
    return %arg0, %c0_i32 : i32, i32
  }
}

</mosaic_0001>

<bundles_post_ra>
// kernel: tpu_custom_call.1
= control target key start
LH: loop header
LB: loop body
LE: loop exit
PB: predicated region body
PF: predicated region fallthrough
CT: control target
= control target key end

     0   :  { %s1520_s0 = inlined_call_operand.vmem [shape: bf16[16,32], index: 0, kind: input, shape index: {}]   ;;  %s1521_s1 = inlined_call_operand.vmem [shape: bf16[32,96], index: 1, kind: input, shape index: {}]   ;;  %s1522_s2 = inlined_call_operand.vmem [shape: f32[96,14], index: 2, kind: input, shape index: {}]   ;;  %s1523_s3 = inlined_call_operand.vmem [shape: f32[7,32], index: 3, kind: input, shape index: {}]   ;;  %s1524_s4 = inlined_call_operand.vmem [shape: f32[32,31], index: 4, kind: input, shape index: {}]   ;;  %s1525_s5 = inlined_call_operand.vmem [shape: f32[32,16], index: 5, kind: input, shape index: {}]   ;;  %s1526_s6 = inlined_call_operand.vmem [shape: f32[17,7], index: 6, kind: input, shape index: {}]   ;;  %s1527_s7 = inlined_call_operand.vmem [shape: f32[3,32], index: 7, kind: input, shape index: {}]   ;;  %s1528_s8 = inlined_call_operand.hbm [shape: f32[16,128], index: 8, kind: output, shape index: {}]  }
   0x1   :  { %v924_v0 = vld [vmem:[%s1521_s1 + $0x8] sm:$0xff]  ;;  %v89_v1 = vld [vmem:[%s1522_s2 + $0x58] sm:$0xff]  ;;  %v88_v2 = vld [vmem:[%s1522_s2 + $0x50] sm:$0xff] }
   0x2   :  { %70 = vmatpush.bf16.msra.mxu0 %v924_v0  ;;  %v923_v3 = vld [vmem:[%s1521_s1] sm:$0xff]  ;;  %101 = vmatpush.msra.mxu1 %v89_v1  ;;  %v87_v4 = vld [vmem:[%s1522_s2 + $0x48] sm:$0xff] }
   0x3   :  { %v922_v5 = vld [vmem:[%s1520_s0] sm:$0xff] }
   0x4   :  { %102 = vmatpush.msra.mxu1 %v88_v2  ;;  %v86_v6 = vld [vmem:[%s1522_s2 + $0x40] sm:$0xff] }
   0x5   :  { %13 = vsyncpa [#allocation3], 0  ;;  %vm60_vm0 = vcmask 261120   ;;  %v85_v7 = vld [vmem:[%s1522_s2 + $0x38] sm:$0xff]  ;;  %v84_v8 = vld [vmem:[%s1522_s2 + $0x30] sm:$0xff]  ;;  %vm90_vm1 = vcmask 785408  }
   0x6   :  { %71 = vmatpush.bf16.msra.mxu0 %v923_v3  ;;  %103 = vmatpush.msra.mxu1 %v87_v4  ;;  %v83_v9 = vld [vmem:[%s1522_s2 + $0x28] sm:$0xff]  ;;  %v82_v10 = vld [vmem:[%s1522_s2 + $0x20] sm:$0xff]  ;;  %v81_v11 = vld [vmem:[%s1522_s2 + $0x18] sm:$0xff]  ;;  %s1015_s12 = smov 96   ;;  %vm134_vm2 = vcmask 56320   ;;  %s1016_s14 = smov 64  }
   0x7   :  { %v80_v12 = vld [vmem:[%s1522_s2 + $0x10] sm:$0xff]  ;;  %v79_v13 = vld [vmem:[%s1522_s2 + $0x8] sm:$0xff]  ;;  %v78_v14 = vld [vmem:[%s1522_s2] sm:$0xff]  ;;  %vm180_vm3 = vcmask 1046528   ;;  %s1017_s17 = smov 7   ;;  %s1023_s2 = smov 114  }
   0x8   :  { %104 = vmatpush.msra.mxu1 %v86_v6  ;;  %v1143_v27 = vld [vmem:[%s1527_s7] sm:$0x7]  ;;  %s888_s7 = sshll.u32 %s1528_s8, 4  ;;  %s1028_s18 = smov 8   ;;  %s889_s7 = int_to_ptr.hbm [resolvable:$true] %s888_s7 }
   0x9   :  { %912 = vmatmul.msk.bf16.vlgmr.msra.gmra.mxu0 %vm60_vm0, %v922_v5  ;;  %v219_v28 = vperm.slane %v1143_v27, 0  ;;  %v173_v29 = vld [vmem:[%s1523_s3] sm:$0x7f] }
   0xa   :  { %105 = vmatpush.msra.mxu1 %v85_v7  ;;  %915 = vmatpush.msk.msra.mxu2 %vm180_vm3, %v173_v29  ;;  %v1159_v46 = vld [vmem:[%s1526_s6] sm:$0xff]  ;;  %v394_v29 = vld [vmem:[%s1524_s4 + $0x8] sm:$0xff] }
   0xb   :  { %v1162_v47 = vperm.slane %v1159_v46, 0  ;;  %v32_v48 = vld [vmem:[%s1520_s0] sm:$0xff]   ;;  %s1018_s0 = smov 121  }
   0xc   :  { %106 = vmatpush.msra.mxu1 %v84_v8  ;;  %v34_v49 = vunpack.c.h.bf16 %v32_v48  ;;  %v33_v50 = vunpack.c.l.bf16 %v32_v48  ;;  %v1019_v48 = vmov 32.0  }
   0xe   :  { %107 = vmatpush.msra.mxu1 %v83_v9 }
  0x10   :  { %108 = vmatpush.msra.mxu1 %v82_v10 }
  0x12   :  { %109 = vmatpush.msra.mxu1 %v81_v11 }
  0x14   :  { %110 = vmatpush.msra.mxu1 %v80_v12 }
  0x16   :  { %111 = vmatpush.msra.mxu1 %v79_v13 }
  0x18   :  { %112 = vmatpush.msra.mxu1 %v78_v14 }
  0x86   :  { %v1120_v15 = vpop.f32.mrf.mxu0 }
  0x87   :  { %120 = vrot.lane.b32.xlu0 %v1120_v15, %s1015_s12  ;;  %913 = vmatmul.msk.f32.vlgmr.msra.gmra.mxu1 %vm90_vm1, %v1120_v15 }
  0x8e   :  { %v1124_v16 = vpop.f32.mrf.mxu0 }
  0x8f   :  { %122 = vrot.lane.b32.xlu0 %v1124_v16, %s1015_s12  ;;  %914 = vmatmul.msk.f32.gmra.mxu1 %vm90_vm1, %v1124_v16 }
  0xf9   :  { %v121_v17 = vpop.permute.xlu0 %120 }
  0xfa   :  { %v126_v18 = vmul.f32 %v121_v17, %v1120_v15 }
  0xfc   :  { %v128_v19 = vsel %vm60_vm0, %v126_v18, 0.0 }
  0xfd   :  { %129 = vadd.xlane.f32.xlu1 %v128_v19 }
 0x101   :  { %v123_v20 = vpop.permute.xlu0 %122 }
 0x102   :  { %v127_v21 = vmul.f32 %v123_v20, %v1124_v16 }
 0x104   :  { %v1131_v22 = vpop.f32.mrf.mxu1  ;;  %v131_v23 = vsel %vm60_vm0, %v127_v21, 0.0 }
 0x105   :  { %132 = vadd.xlane.f32.xlu2 %v131_v23  ;;  %v135_v24 = vsel %vm134_vm2, %v1131_v22, -inf }
 0x106   :  { %136 = vmax.xlane.f32.xlu1 %v135_v24 }
 0x10c   :  { %v1136_v25 = vpop.f32.mrf.mxu1 }
 0x10d   :  { %v138_v26 = vsel %vm134_vm2, %v1136_v25, -inf }
 0x10e   :  { %139 = vmax.xlane.f32.xlu2 %v138_v26  ;;  %v396_v26 = vld [vmem:[%s1524_s4 + $0x18] sm:$0xff] }
 0x10f   :  { %417 = vmatpush.msra.mxu3 %v396_v26 }
 0x11f   :  { %221 = vrot.lane.b32.xlu1 %v219_v28, %s1016_s14  ;;  %v395_v28 = vld [vmem:[%s1524_s4 + $0x10] sm:$0xff] }
 0x120   :  { %418 = vmatpush.msra.mxu3 %v395_v28 }
 0x122   :  { %419 = vmatpush.msra.mxu3 %v394_v29 }
 0x126   :  { %228 = vrot.lane.b32.xlu2 %v33_v50, %s1016_s14 }
 0x170   :  { %v130_v30 = vpop.xlane.xlu1 %129 }
 0x178   :  { %v133_v31 = vpop.xlane.xlu2 %132 }
 0x179   :  { %v137_v32 = vpop.xlane.xlu1 %136 }
 0x17a   :  { %v141_v33 = vmax.f32 %v130_v30, %v137_v32 }
 0x17c   :  { %v143_v34 = vsub.f32 %v130_v30, %v141_v33  ;;  %v149_v35 = vsub.f32 %v1131_v22, %v141_v33  ;;  %v393_v30 = vld [vmem:[%s1524_s4] sm:$0xff] }
 0x17d   :  { %420 = vmatpush.msra.mxu3 %v393_v30 }
 0x17e   :  { %v151_v36 = vmul.f32 1.442695, %v149_v35  ;;  %v145_v53 = vmul.f32 1.442695, %v143_v34  ;;  %v310_v34 = vperm.slane %v1143_v27, 2 }
 0x180   :  { %951 = vpow2.f32 %v151_v36 }
 0x181   :  { %v140_v37 = vpop.xlane.xlu2 %139 }
 0x182   :  { %v142_v38 = vmax.f32 %v133_v31, %v140_v37  ;;  %v1210_v37 = vperm.slane %v1143_v27, 1 }
 0x184   :  { %v144_v39 = vsub.f32 %v133_v31, %v142_v38  ;;  %v150_v40 = vsub.f32 %v1136_v25, %v142_v38 }
 0x186   :  { %v153_v41 = vmul.f32 1.442695, %v150_v40  ;;  %v952_v42 = vpop.eup %951  ;;  %v147_v55 = vmul.f32 1.442695, %v144_v39 }
 0x187   :  { %916 = vmatmul.msk.f32.vlgmr.msra.gmra.mxu2 %vm134_vm2, %v952_v42  ;;  %v155_v43 = vsel %vm134_vm2, %v952_v42, 0.0 }
 0x188   :  { %953 = vpow2.f32 %v153_v41  ;;  %156 = vadd.xlane.f32.xlu0 %v155_v43  ;;  %v360_v43 = vperm.slane %v1159_v46, 1 }
 0x189   :  { %955 = vpow2.f32 %v145_v53  ;;  %v229_v63 = vpop.permute.xlu2 %228 }
 0x18a   :  { %957 = vpow2.f32 %v147_v55 }
 0x18e   :  { %v954_v44 = vpop.eup %953 }
 0x18f   :  { %917 = vmatmul.msk.f32.gmra.mxu2 %vm134_vm2, %v954_v44  ;;  %v158_v45 = vsel %vm134_vm2, %v954_v44, 0.0  ;;  %v956_v57 = vpop.eup %955 }
 0x190   :  { %159 = vadd.xlane.f32.xlu1 %v158_v45  ;;  %v958_v60 = vpop.eup %957  ;;  %v171_v3 = vmul.f32 %v956_v57, %v1120_v15 }
 0x191   :  { %v222_v54 = vpop.permute.xlu1 %221  ;;  %v172_v11 = vmul.f32 %v958_v60, %v1124_v16 }
 0x19c   :  { %335 = vrot.lane.b32.xlu0 %v1162_v47, %s1017_s17 }
 0x1a9   :  { %230 = vrot.lane.b32.xlu1 %v34_v49, %s1016_s14 }
 0x1fb   :  { %v157_v56 = vpop.xlane.xlu0 %156 }
 0x1fc   :  { %v161_v58 = vadd.f32 %v956_v57, %v157_v56 }
 0x1fe   :  { %959 = vrcp.f32 %v161_v58 }
 0x203   :  { %v160_v59 = vpop.xlane.xlu1 %159 }
 0x204   :  { %v162_v61 = vadd.f32 %v958_v60, %v160_v59  ;;  %v960_v62 = vpop.eup %959 }
 0x205   :  { %v165_v0 = vmul.f32 %v960_v62, %v161_v58 }
 0x206   :  { %961 = vrcp.f32 %v162_v61 }
 0x207   :  { %v167_v1 = vsub.f32 2.0, %v165_v0 }
 0x209   :  { %v169_v6 = vmul.f32 %v960_v62, %v167_v1 }
 0x20a   :  { %v201_v51 = vpop.f32.mrf.mxu2 }
 0x20b   :  { %209 = vrot.lane.b32.xlu2 %v201_v51, %s1016_s14 }
 0x20c   :  { %v962_v2 = vpop.eup %961 }
 0x20d   :  { %v166_v5 = vmul.f32 %v962_v2, %v162_v61 }
 0x20e   :  { %v336_v23 = vpop.permute.xlu0 %335 }
 0x20f   :  { %v168_v9 = vsub.f32 2.0, %v166_v5  ;;  %v1185_v24 = vmax.f32 %v1136_v25, %v336_v23  ;;  %v338_v45 = vmax.f32 %v1131_v22, %v336_v23 }
 0x211   :  { %v170_v14 = vmul.f32 %v962_v2, %v168_v9  ;;  %v1020_v2 = vmov 28  }
 0x212   :  { %v204_v52 = vpop.f32.mrf.mxu2  ;;  %939 = vset.pattern.permute.xlu2 %v1020_v2  ;;  %940 = vset.pattern.permute.xlu0 %v1020_v2 }
 0x213   :  { %211 = vrot.lane.b32.xlu2 %v204_v52, %s1016_s14 }
 0x21b   :  { %v231_v19 = vpop.permute.xlu1 %230 }
 0x265   :  { %v210_v4 = vpop.permute.xlu2 %209 }
 0x266   :  { %v215_v7 = vadd.f32 %v210_v4, %v171_v3 }
 0x268   :  { %v217_v8 = vmul.f32 %v215_v7, %v169_v6  ;;  %v340_v7 = vsub.f32 %v1131_v22, %v338_v45 }
 0x26a   :  { %v224_v10 = vadd.f32 %v222_v54, %v217_v8  ;;  %v341_v8 = vsub.f32 %v1136_v25, %v1185_v24 }
 0x26c   :  { %v234_v12 = vadd.f32 %v229_v63, %v224_v10  ;;  %v342_v10 = vmul.f32 1.442695, %v340_v7 }
 0x26d   :  { %v212_v13 = vpop.permute.xlu2 %211 }
 0x26e   :  { %v216_v17 = vadd.f32 %v212_v13, %v172_v11  ;;  %238 = vrot.lane.b32.xlu2 %v234_v12, %s1016_s14  ;;  %v344_v11 = vmul.f32 1.442695, %v341_v8 }
 0x270   :  { %v218_v18 = vmul.f32 %v216_v17, %v170_v14 }
 0x272   :  { %v225_v20 = vadd.f32 %v222_v54, %v218_v18 }
 0x274   :  { %v1176_v21 = vadd.f32 %v231_v19, %v225_v20 }
 0x276   :  { %397 = vrot.lane.b32.xlu2 %v1120_v15, %s1016_s14  ;;  %240 = vrot.lane.b32.xlu1 %v1176_v21, %s1016_s14 }
 0x27e   :  { %399 = vrot.lane.b32.xlu1 %v1124_v16, %s1016_s14 }
 0x286   :  { %350 = vrot.lane.b32.xlu1 %v1185_v24, %s1018_s0 }
 0x2c8   :  { %v239_v31 = vpop.permute.xlu2 %238 }
 0x2c9   :  { %v244_v32 = vsel %vm60_vm0, %v239_v31, 0.0 }
 0x2ca   :  { %245 = vadd.xlane.f32.xlu0 %v244_v32 }
 0x2d0   :  { %v1202_v33 = vpop.permute.xlu2 %397 }
 0x2d1   :  { %918 = vmatmul.msk.f32.vlgmr.msra.gmra.mxu3 %vm60_vm0, %v1202_v33 }
 0x2de   :  { %312 = vrot.lane.b32.xlu0 %v310_v34, %s1016_s14 }
 0x2e8   :  { %v241_v35 = vpop.permute.xlu1 %240 }
 0x2e9   :  { %v247_v36 = vsel %vm60_vm0, %v241_v35, 0.0  ;;  %v469_v35 = vmul.f32 %v1120_v15, %v1120_v15 }
 0x2ea   :  { %248 = vadd.xlane.f32.xlu2 %v247_v36 }
 0x2f0   :  { %v400_v38 = vpop.permute.xlu1 %399 }
 0x2f1   :  { %v468_v39 = vmul.f32 %v400_v38, %v1210_v37  ;;  %919 = vmatmul.msk.f32.gmra.mxu3 %vm60_vm0, %v400_v38 }
 0x2f3   :  { %v486_v3 = vmul.f32 %v468_v39, %v468_v39 }
 0x2f5   :  { %v490_v4 = vsel %vm60_vm0, %v486_v3, 0.0 }
 0x2f8   :  { %v351_v40 = vpop.permute.xlu1 %350 }
 0x2f9   :  { %v355_v41 = vsub.f32 %v1162_v47, %v351_v40 }
 0x2fb   :  { %v358_v42 = vmul.f32 1.442695, %v355_v41 }
 0x2fd   :  { %963 = vpow2.f32 %v358_v42 }
 0x2fe   :  { %965 = vrcp.f32 %v1019_v48 }
 0x302   :  { %305 = vrot.lane.b32.xlu2 %v1210_v37, %s1016_s14 }
 0x303   :  { %v1218_v44 = vpop.eup %963 }
 0x304   :  { %v362_v27 = vmul.f32 %v1218_v44, %v360_v43  ;;  %v966_v49 = vpop.eup %965 }
 0x305   :  { %v251_v50 = vmul.f32 32.0, %v966_v49  ;;  %vm255_vm4 = vweird.f32 %v966_v49 }
 0x306   :  { %367 = vrot.lane.b32.xlu0 %v362_v27, %s1017_s17 }
 0x307   :  { %v252_v51 = vsub.f32 1.0, %v251_v50 }
 0x309   :  { %v253_v52 = vmul.f32 %v966_v49, %v252_v51 }
 0x30a   :  { %348 = vrot.lane.b32.xlu2 %v338_v45, %s1018_s0 }
 0x30b   :  { %v254_v53 = vadd.f32 %v966_v49, %v253_v52 }
 0x30d   :  { %v1224_v54 = vsel %vm255_vm4, %v966_v49, %v254_v53 }
 0x33d   :  { %v246_v55 = vpop.xlane.xlu0 %245 }
 0x33e   :  { %v257_v56 = vmul.f32 %v1224_v54, %v246_v55 }
 0x340   :  { %v1227_v57 = vsub.f32 %v234_v12, %v257_v56 }
 0x342   :  { %v261_v58 = vmul.f32 %v1227_v57, %v1227_v57 }
 0x344   :  { %265 = vrot.lane.b32.xlu1 %v261_v58, %s1016_s14  ;;  %v597_v58 = vperm.slane %v1159_v46, 6 }
 0x350   :  { %v1248_v9 = vpop.permute.xlu0 %312 }
 0x354   :  { %v1242_v6 = vpop.f32.mrf.mxu3 }
 0x35d   :  { %v249_v59 = vpop.xlane.xlu2 %248 }
 0x35e   :  { %v258_v30 = vmul.f32 %v1224_v54, %v249_v59 }
 0x360   :  { %v1256_v32 = vsub.f32 %v1176_v21, %v258_v30 }
 0x362   :  { %v262_v34 = vmul.f32 %v1256_v32, %v1256_v32 }
 0x365   :  { %v1232_v60 = vpop.permute.xlu2 %305 }
 0x36d   :  { %v349_v61 = vpop.permute.xlu2 %348 }
 0x36e   :  { %v354_v62 = vsub.f32 %v1162_v47, %v349_v61 }
 0x370   :  { %v356_v63 = vmul.f32 1.442695, %v354_v62 }
 0x372   :  { %967 = vpow2.f32 %v356_v63 }
 0x373   :  { %969 = vpow2.f32 %v342_v10  ;;  %v470_v10 = vmul.f32 %v1124_v16, %v1124_v16 }
 0x374   :  { %971 = vpow2.f32 %v344_v11  ;;  %v467_v11 = vmul.f32 %v1202_v33, %v1210_v37 }
 0x378   :  { %v1235_v0 = vpop.eup %967  ;;  %v368_v12 = vpop.permute.xlu0 %367 }
 0x379   :  { %v361_v1 = vmul.f32 %v1235_v0, %v360_v43  ;;  %v970_v13 = vpop.eup %969 }
 0x37a   :  { %v972_v14 = vpop.eup %971 }
 0x37b   :  { %365 = vrot.lane.b32.xlu2 %v361_v1, %s1017_s17  ;;  %v372_v18 = vadd.f32 %v972_v14, %v368_v12  ;;  %v543_v1 = vperm.slane %v1159_v46, 2 }
 0x383   :  { %497 = vrot.lane.b32.xlu2 %v468_v39, %s1016_s14 }
 0x3ac   :  { %491 = vadd.xlane.f32.xlu2 %v490_v4  ;;  %v431_v4 = vld [vmem:[%s1525_s5 + $0x18] sm:$0xff] }
 0x3ad   :  { %454 = vmatpush.msrb.mxu2 %v431_v4 }
 0x3b6   :  { %v266_v5 = vpop.permute.xlu1 %265 }
 0x3b7   :  { %v271_v47 = vsel %vm60_vm0, %v266_v5, 0.0  ;;  %v429_v5 = vld [vmem:[%s1525_s5 + $0x8] sm:$0xff] }
 0x3b8   :  { %272 = vadd.xlane.f32.xlu1 %v271_v47  ;;  %v428_v47 = vld [vmem:[%s1525_s5] sm:$0xff] }
 0x3c4   :  { %533 = vperm.xlu2 %939, %v1242_v6  }
 0x3d5   :  { %v366_v17 = vpop.permute.xlu2 %365 }
 0x3d6   :  { %v371_v19 = vadd.f32 %v970_v13, %v366_v17 }
 0x3d8   :  { %973 = vrcp.f32 %v371_v19 }
 0x3d9   :  { %975 = vrcp.f32 %v372_v18 }
 0x3dd   :  { %v1264_v36 = vpop.permute.xlu2 %497 }
 0x3de   :  { %v974_v20 = vpop.eup %973 }
 0x3df   :  { %v375_v23 = vmul.f32 %v974_v20, %v371_v19  ;;  %v976_v22 = vpop.eup %975 }
 0x3e0   :  { %v376_v28 = vmul.f32 %v976_v22, %v372_v18 }
 0x3e1   :  { %v377_v26 = vsub.f32 2.0, %v375_v23 }
 0x3e2   :  { %v378_v29 = vsub.f32 2.0, %v376_v28 }
 0x3e3   :  { %v379_v25 = vmul.f32 %v974_v20, %v377_v26 }
 0x3e4   :  { %v380_v31 = vmul.f32 %v976_v22, %v378_v29  ;;  %v1021_v29 = vmov 29  }
 0x3e5   :  { %385 = vrot.lane.b32.xlu0 %v379_v25, %s1018_s0  ;;  %v1251_v24 = vmul.f32 %v970_v13, %v379_v25  ;;  %941 = vset.pattern.permute.xlu2 %v1021_v29 }
 0x3e6   :  { %v1266_v38 = vmul.f32 %v972_v14, %v380_v31  ;;  %v485_v14 = vmul.f32 %v467_v11, %v467_v11 }
 0x3e7   :  { %v517_v33 = vmul.f32 %v1251_v24, %v1251_v24 }
 0x3e8   :  { %v1270_v39 = vmul.f32 %v1266_v38, %v1266_v38  ;;  %v487_v17 = vsel %vm60_vm0, %v485_v14, 0.0 }
 0x3ed   :  { %387 = vrot.lane.b32.xlu0 %v380_v31, %s1018_s0 }
 0x3f5   :  { %267 = vrot.lane.b32.xlu0 %v262_v34, %s1016_s14 }
 0x3fd   :  { %473 = vrot.lane.b32.xlu0 %v469_v35, %s1016_s14 }
 0x41f   :  { %v492_v21 = vpop.xlane.xlu2 %491 }
 0x420   :  { %v1273_v40 = vmul.f32 %v1270_v39, %v492_v21 }
 0x427   :  { %v1322_v12 = vpop.permute.xlu2 %533 }
 0x42b   :  { %v273_v41 = vpop.xlane.xlu1 %272 }
 0x42c   :  { %v277_v42 = vmul.f32 %v273_v41, %v1224_v54 }
 0x42e   :  { %v279_v43 = vadd.f32 1e-05, %v277_v42 }
 0x430   :  { %977 = vrsqrt.f32 %v279_v43  ;;  %vm287_vm6 = vweird.f32 %v279_v43 }
 0x436   :  { %v978_v15 = vpop.eup %977 }
 0x437   :  { %v282_v27 = vmul.f32 %v978_v15, %v279_v43  ;;  %vm288_vm5 = vweird.f32 %v978_v15 }
 0x438   :  { %vm289_vm7 = vmor %vm287_vm6, %vm288_vm5 }
 0x439   :  { %v283_v45 = vmul.f32 %v978_v15, %v282_v27  ;;  %v565_v27 = vperm.slane %v1159_v46, 4 }
 0x43b   :  { %v284_v48 = vmul.f32 0.5, %v283_v45 }
 0x43d   :  { %v285_v49 = vsub.f32 1.5, %v284_v48  ;;  %v1022_v48 = vmov 30  }
 0x43e   :  { %943 = vset.pattern.permute.xlu1 %v1022_v48 }
 0x43f   :  { %v286_v50 = vmul.f32 %v978_v15, %v285_v49  ;;  %v688_v49 = vperm.slane %v1159_v46, 7 }
 0x441   :  { %v290_v51 = vsel %vm289_vm7, %v978_v15, %v286_v50 }
 0x442   :  { %v301_v52 = vmul.f32 %v290_v51, %v1227_v57  ;;  %v1369_v51 = vld [vmem:[%s1526_s6 + $0x8] sm:$0xff] }
 0x443   :  { %v753_v4 = vperm.slane %v1369_v51, 2  ;;  %v766_v14 = vperm.slane %v1369_v51, 3 }
 0x444   :  { %v308_v53 = vmul.f32 %v1232_v60, %v301_v52  ;;  %v726_v52 = vperm.slane %v1369_v51, 1 }
 0x446   :  { %v1279_v55 = vadd.f32 %v1248_v9, %v308_v53 }
 0x448   :  { %434 = vrot.lane.b32.xlu2 %v1279_v55, %s1016_s14  ;;  %v317_v56 = vmul.f32 %v1279_v55, %v1279_v55 }
 0x450   :  { %321 = vrot.lane.b32.xlu2 %v317_v56, %s1016_s14 }
 0x457   :  { %v386_v59 = vpop.permute.xlu0 %385 }
 0x458   :  { %v1288_v61 = vmul.f32 %v1235_v0, %v386_v59  ;;  %v701_v59 = vperm.slane %v1369_v51, 0 }
 0x45a   :  { %v598_v57 = vmul.f32 %v597_v58, %v1288_v61 }
 0x45c   :  { %602 = vrot.lane.b32.xlu2 %v598_v57, %s1017_s17 }
 0x45f   :  { %v388_v62 = vpop.permute.xlu0 %387 }
 0x460   :  { %v1295_v63 = vmul.f32 %v1218_v44, %v388_v62  ;;  %v430_v44 = vld [vmem:[%s1525_s5 + $0x10] sm:$0xff] }
 0x461   :  { %455 = vmatpush.msrb.mxu2 %v430_v44 }
 0x462   :  { %v545_v2 = vmul.f32 %v543_v1, %v1295_v63  ;;  %v520_v42 = vmul.f32 %v1295_v63, %v1295_v63  ;;  %v728_v53 = vmul.f32 %v726_v52, %v1295_v63  ;;  %v755_v44 = vmul.f32 %v753_v4, %v1295_v63 }
 0x463   :  { %456 = vmatpush.msrb.mxu2 %v429_v5 }
 0x464   :  { %550 = vrot.lane.b32.xlu2 %v545_v2, %s1017_s17  ;;  %v567_v45 = vmul.f32 %v565_v27, %v520_v42  ;;  %v690_v50 = vmul.f32 %v688_v49, %v520_v42  ;;  %v599_v2 = vmul.f32 %v597_v58, %v1295_v63  ;;  %v796_v58 = vperm.slane %v1369_v51, 5 }
 0x465   :  { %457 = vmatpush.msrb.mxu2 %v428_v47 }
 0x467   :  { %v268_v0 = vpop.permute.xlu0 %267 }
 0x468   :  { %v274_v3 = vsel %vm60_vm0, %v268_v0, 0.0  ;;  %v727_v0 = vmul.f32 %v726_v52, %v1288_v61 }
 0x469   :  { %275 = vadd.xlane.f32.xlu0 %v274_v3  ;;  %v578_v3 = vperm.slane %v1159_v46, 5 }
 0x46f   :  { %v474_v7 = vpop.permute.xlu0 %473 }
 0x470   :  { %v479_v8 = vsel %vm60_vm0, %v474_v7, 0.0  ;;  %v754_v7 = vmul.f32 %v753_v4, %v1288_v61 }
 0x471   :  { %480 = vadd.xlane.f32.xlu1 %v479_v8 }
 0x47d   :  { %475 = vrot.lane.b32.xlu0 %v470_v10, %s1016_s14 }
 0x48a   :  { %495 = vrot.lane.b32.xlu1 %v467_v11, %s1016_s14 }
 0x4a2   :  { %v435_v13 = vpop.permute.xlu2 %434 }
 0x4a3   :  { %920 = vmatmul.msk.f32.vlgmr.msrb.gmra.mxu2 %vm60_vm0, %v435_v13 }
 0x4aa   :  { %v322_v47 = vpop.permute.xlu2 %321 }
 0x4b4   :  { %488 = vadd.xlane.f32.xlu1 %v487_v17 }
 0x4b6   :  { %v1408_v8 = vpop.permute.xlu2 %602 }
 0x4be   :  { %v551_v13 = vpop.permute.xlu2 %550 }
 0x4cd   :  { %585 = vrot.lane.b32.xlu1 %v1242_v6, %s1017_s17 }
 0x4dc   :  { %v276_v16 = vpop.xlane.xlu0 %275 }
 0x4dd   :  { %v278_v18 = vmul.f32 %v276_v16, %v1224_v54 }
 0x4df   :  { %v280_v19 = vadd.f32 1e-05, %v278_v18 }
 0x4e1   :  { %979 = vrsqrt.f32 %v280_v19  ;;  %vm297_vm9 = vweird.f32 %v280_v19 }
 0x4e4   :  { %v481_v37 = vpop.xlane.xlu1 %480 }
 0x4e5   :  { %v1331_v20 = vmul.f32 %v517_v33, %v481_v37 }
 0x4e7   :  { %v980_v23 = vpop.eup %979 }
 0x4e8   :  { %v292_v22 = vmul.f32 %v980_v23, %v280_v19  ;;  %vm298_vm8 = vweird.f32 %v980_v23 }
 0x4e9   :  { %vm299_vm10 = vmor %vm297_vm9, %vm298_vm8 }
 0x4ea   :  { %v293_v26 = vmul.f32 %v980_v23, %v292_v22  ;;  %v327_v22 = vsel %vm60_vm0, %v322_v47, 0.0 }
 0x4ec   :  { %v294_v28 = vmul.f32 0.5, %v293_v26 }
 0x4ee   :  { %v295_v25 = vsub.f32 1.5, %v294_v28 }
 0x4ef   :  { %v476_v30 = vpop.permute.xlu0 %475 }
 0x4f0   :  { %v296_v31 = vmul.f32 %v980_v23, %v295_v25  ;;  %v482_v54 = vsel %vm60_vm0, %v476_v30, 0.0 }
 0x4f1   :  { %483 = vadd.xlane.f32.xlu0 %v482_v54 }
 0x4f2   :  { %v300_v34 = vsel %vm299_vm10, %v980_v23, %v296_v31  ;;  %v811_v23 = vperm.slane %v1369_v51, 6  ;;  %v593_v31 = vmul.f32 %v1242_v6, %v1251_v24 }
 0x4f3   :  { %v302_v35 = vmul.f32 %v300_v34, %v1256_v32  ;;  %v556_v32 = vperm.slane %v1159_v46, 3  ;;  %v783_v46 = vperm.slane %v1369_v51, 4 }
 0x4f5   :  { %v309_v21 = vmul.f32 %v1232_v60, %v302_v35  ;;  %v1349_v60 = vpop.f32.mrf.mxu3  ;;  %v785_v5 = vmul.f32 %v783_v46, %v1295_v63  ;;  %v784_v37 = vmul.f32 %v783_v46, %v1288_v61 }
 0x4f7   :  { %v1337_v41 = vadd.f32 %v1248_v9, %v309_v21  ;;  %v544_v9 = vmul.f32 %v543_v1, %v1288_v61  ;;  %v950_v21 = vld [vmem:[%s1526_s6 + $0x10] ss:$0 sm:$0xff]  ;;  %s1026_s6 = smov [#allocation2]  }
 0x4f8   :  { %s886_s15 = sshll.u32 %s1026_s6, 4  ;;  %s887_s15 = int_to_ptr.vmem [resolvable:$true] %s886_s15 }
 0x4f9   :  { %436 = vrot.lane.b32.xlu1 %v1337_v41, %s1016_s14  ;;  %v318_v10 = vmul.f32 %v1337_v41, %v1337_v41  ;;  %v502_v11 = vmul.f32 %v1264_v36, %v1337_v41 }
 0x4fc   :  { %v496_v43 = vpop.permute.xlu1 %495 }
 0x4fd   :  { %v501_v15 = vmul.f32 %v496_v43, %v1279_v55  ;;  %v519_v55 = vmul.f32 %v1288_v61, %v1288_v61 }
 0x4ff   :  { %505 = vrot.lane.b32.xlu2 %v501_v15, %s1016_s14  ;;  %v566_v56 = vmul.f32 %v565_v27, %v519_v55  ;;  %v689_v62 = vmul.f32 %v688_v49, %v519_v55 }
 0x501   :  { %572 = vrot.lane.b32.xlu1 %v567_v45, %s1017_s17 }
 0x505   :  { %523 = vrot.lane.b32.xlu0 %v1288_v61, %s1017_s17 }
 0x507   :  { %710 = vrot.lane.b32.xlu2 %v1349_v60, %s1018_s0 }
 0x509   :  { %548 = vrot.lane.b32.xlu1 %v544_v9, %s1017_s17  ;;  %v824_v9 = vperm.slane %v1369_v51, 7 }
 0x50d   :  { %525 = vrot.lane.b32.xlu0 %v1295_v63, %s1017_s17 }
 0x50f   :  { %744 = vperm.xlu2 %941, %v1242_v6  }
 0x511   :  { %558 = vrot.lane.b32.xlu1 %v556_v32, %s1017_s17 }
 0x515   :  { %587 = vrot.lane.b32.xlu0 %v1349_v60, %s1017_s17 }
 0x517   :  { %695 = vrot.lane.b32.xlu2 %v690_v50, %s1017_s17 }
 0x518   :  { %944 = vset.pattern.permute.xlu2 %v1022_v48 }
 0x519   :  { %708 = vrot.lane.b32.xlu1 %v1242_v6, %s1018_s0 }
 0x51d   :  { %538 = vperm.xlu0 %940, %v1349_v60  }
 0x51f   :  { %733 = vrot.lane.b32.xlu2 %v728_v53, %s1017_s17 }
 0x521   :  { %718 = vrot.lane.b32.xlu1 %v1349_v60, %s1023_s2 }
 0x525   :  { %570 = vrot.lane.b32.xlu0 %v566_v56, %s1017_s17 }
 0x526   :  { %942 = vset.pattern.permute.xlu0 %v1021_v29 }
 0x527   :  { %703 = vrot.lane.b32.xlu2 %v701_v59, %s1017_s17  ;;  %v489_v57 = vpop.xlane.xlu1 %488 }
 0x528   :  { %v1383_v1 = vmul.f32 %v517_v33, %v489_v57 }
 0x529   :  { %693 = vrot.lane.b32.xlu1 %v689_v62, %s1017_s17 }
 0x52d   :  { %604 = vrot.lane.b32.xlu0 %v599_v2, %s1017_s17 }
 0x52f   :  { %778 = vperm.xlu2 %944, %v1349_v60  }
 0x531   :  { %731 = vrot.lane.b32.xlu1 %v727_v0, %s1017_s17 }
 0x535   :  { %580 = vrot.lane.b32.xlu0 %v578_v3, %s1017_s17 }
 0x537   :  { %798 = vrot.lane.b32.xlu2 %v796_v58, %s1017_s17 }
 0x539   :  { %760 = vrot.lane.b32.xlu1 %v755_v44, %s1017_s17 }
 0x53d   :  { %716 = vrot.lane.b32.xlu0 %v1242_v6, %s1023_s2 }
 0x53f   :  { %v586_v17 = vpop.permute.xlu1 %585  ;;  %839 = vrot.lane.b32.xlu2 %v950_v21, %s1017_s17 }
 0x541   :  { %774 = vperm.xlu1 %943, %v1242_v6   ;;  %v594_v6 = vmul.f32 %v1349_v60, %v1266_v38 }
 0x545   :  { %748 = vperm.xlu0 %942, %v1349_v60  }
 0x549   :  { %790 = vrot.lane.b32.xlu1 %v785_v5, %s1017_s17  ;;  %v541_v5 = vmul.f32 %v1322_v12, %v1251_v24 }
 0x54d   :  { %758 = vrot.lane.b32.xlu0 %v754_v7, %s1017_s17 }
 0x54e   :  { %949 = vset.pattern.permute.xlu0 %v1022_v48 }
 0x555   :  { %323 = vrot.lane.b32.xlu0 %v318_v10, %s1016_s14 }
 0x559   :  { %v506_v18 = vpop.permute.xlu2 %505 }
 0x55a   :  { %v511_v44 = vsel %vm60_vm0, %v506_v18, 0.0 }
 0x55d   :  { %507 = vrot.lane.b32.xlu0 %v502_v11, %s1016_s14 }
 0x561   :  { %v711_v36 = vpop.permute.xlu2 %710 }
 0x564   :  { %v484_v16 = vpop.xlane.xlu0 %483 }
 0x565   :  { %v564_v19 = vmul.f32 %v1270_v39, %v484_v16  ;;  %768 = vrot.lane.b32.xlu0 %v766_v14, %s1017_s17 }
 0x569   :  { %v1426_v29 = vpop.permute.xlu2 %744 }
 0x56b   :  { %v437_v33 = vpop.permute.xlu1 %436 }
 0x56c   :  { %921 = vmatmul.msk.f32.gmra.mxu2 %vm60_vm0, %v437_v33 }
 0x56d   :  { %788 = vrot.lane.b32.xlu0 %v784_v37, %s1017_s17 }
 0x571   :  { %v696_v43 = vpop.permute.xlu2 %695 }
 0x572   :  { %v700_v51 = vadd.f32 %v696_v43, %v1273_v40  ;;  %v751_v43 = vmul.f32 %v1426_v29, %v1251_v24 }
 0x573   :  { %v573_v26 = vpop.permute.xlu1 %572  ;;  %328 = vadd.xlane.f32.xlu1 %v327_v22 }
 0x574   :  { %v577_v28 = vadd.f32 %v573_v26, %v564_v19 }
 0x575   :  { %813 = vrot.lane.b32.xlu0 %v811_v23, %s1017_s17 }
 0x577   :  { %v524_v39 = vpop.permute.xlu0 %523 }
 0x578   :  { %v529_v25 = vmul.f32 %v524_v39, %v1251_v24 }
 0x579   :  { %v734_v49 = vpop.permute.xlu2 %733 }
 0x57a   :  { %v591_v30 = vmul.f32 %v586_v17, %v529_v25 }
 0x57b   :  { %v549_v54 = vpop.permute.xlu1 %548 }
 0x57c   :  { %v595_v34 = vadd.f32 %v593_v31, %v591_v30  ;;  %v554_v7 = vadd.f32 %v549_v54, %v541_v5 }
 0x57e   :  { %v608_v47 = vadd.f32 %v1408_v8, %v595_v34 }
 0x57f   :  { %v526_v35 = vpop.permute.xlu0 %525 }
 0x580   :  { %v530_v41 = vmul.f32 %v526_v35, %v1266_v38  ;;  %v610_v11 = vmul.f32 2.0, %v608_v47 }
 0x581   :  { %v704_v57 = vpop.permute.xlu2 %703 }
 0x582   :  { %v715_v42 = vmul.f32 %v711_v36, %v530_v41  ;;  %v707_v0 = vadd.f32 %v704_v57, %v700_v51 }
 0x583   :  { %v559_v15 = vpop.permute.xlu1 %558 }
 0x584   :  { %v1449_v10 = vadd.f32 %v559_v15, %v554_v7 }
 0x586   :  { %v1455_v12 = vmul.f32 %v1449_v10, %v1449_v10 }
 0x587   :  { %v588_v27 = vpop.permute.xlu0 %587 }
 0x588   :  { %v592_v45 = vmul.f32 %v588_v27, %v530_v41 }
 0x58a   :  { %v596_v32 = vadd.f32 %v594_v6, %v592_v45  ;;  %v1024_v45 = vmov 14  }
 0x58b   :  { %v709_v48 = vpop.permute.xlu1 %708  ;;  %945 = vset.pattern.permute.xlu2 %v1024_v45 }
 0x58c   :  { %826 = vrot.lane.b32.xlu1 %v824_v9, %s1017_s17  ;;  %v714_v26 = vmul.f32 %v709_v48, %v529_v25 }
 0x58f   :  { %v539_v50 = vpop.permute.xlu0 %538 }
 0x590   :  { %v542_v52 = vmul.f32 %v539_v50, %v1266_v38 }
 0x592   :  { %v555_v53 = vadd.f32 %v551_v13, %v542_v52 }
 0x593   :  { %v719_v55 = vpop.permute.xlu1 %718 }
 0x594   :  { %v723_v56 = vmul.f32 %v719_v55, %v1266_v38 }
 0x596   :  { %v725_v59 = vadd.f32 %v723_v56, %v715_v42 }
 0x597   :  { %v571_v62 = vpop.permute.xlu0 %570 }
 0x598   :  { %v738_v2 = vadd.f32 %v734_v49, %v725_v59  ;;  %v576_v60 = vadd.f32 %v571_v62, %v1331_v20  ;;  %v1451_v20 = vadd.f32 %v559_v15, %v555_v53 }
 0x59a   :  { %v740_v3 = vmul.f32 2.0, %v738_v2  ;;  %v1459_v8 = vmul.f32 %v1451_v20, %v1451_v20 }
 0x59b   :  { %v694_v16 = vpop.permute.xlu1 %693 }
 0x59c   :  { %v1443_v4 = vadd.f32 %v740_v3, %v707_v0  ;;  %v699_v39 = vadd.f32 %v694_v16, %v1383_v1  ;;  %v805_v0 = vmul.f32 2.0, %v1449_v10  ;;  %v806_v3 = vmul.f32 2.0, %v1451_v20 }
 0x59e   :  { %v706_v34 = vadd.f32 %v704_v57, %v699_v39 }
 0x59f   :  { %v605_v58 = vpop.permute.xlu0 %604  ;;  %512 = vadd.xlane.f32.xlu0 %v511_v44 }
 0x5a0   :  { %v609_v46 = vadd.f32 %v605_v58, %v596_v32 }
 0x5a2   :  { %v611_v13 = vmul.f32 2.0, %v609_v46 }
 0x5a3   :  { %v732_v31 = vpop.permute.xlu1 %731 }
 0x5a7   :  { %v581_v40 = vpop.permute.xlu0 %580 }
 0x5a8   :  { %v583_v14 = vadd.f32 %v581_v40, %v576_v60  ;;  %v584_v17 = vadd.f32 %v581_v40, %v577_v28 }
 0x5aa   :  { %v612_v18 = vadd.f32 %v610_v11, %v583_v14  ;;  %v613_v19 = vadd.f32 %v611_v13, %v584_v17  ;;  %v1474_v14 = vpop.f32.mrf.mxu2 }
 0x5ab   :  { %v761_v56 = vpop.permute.xlu1 %760 }
 0x5ac   :  { %v614_v33 = vmul.f32 0.03125, %v612_v18  ;;  %v615_v37 = vmul.f32 0.03125, %v613_v19 }
 0x5ae   :  { %v618_v36 = vsub.f32 %v614_v33, %v1455_v12  ;;  %v619_v23 = vsub.f32 %v615_v37, %v1459_v8 }
 0x5af   :  { %v717_v22 = vpop.permute.xlu0 %716 }
 0x5b0   :  { %v722_v28 = vmul.f32 %v717_v22, %v1251_v24  ;;  %v620_v25 = vmax.f32 %v618_v36, 0.0  ;;  %v621_v9 = vmax.f32 %v619_v23, 0.0  ;;  %v1025_v23 = vmov 15  }
 0x5b2   :  { %v724_v30 = vadd.f32 %v722_v28, %v714_v26  ;;  %v622_v1 = vadd.f32 1e-05, %v620_v25  ;;  %v623_v6 = vadd.f32 1e-05, %v621_v9 }
 0x5b3   :  { %v775_v18 = vpop.permute.xlu1 %774 }
 0x5b4   :  { %v737_v54 = vadd.f32 %v732_v31, %v724_v30  ;;  %981 = vrsqrt.f32 %v622_v1  ;;  %vm630_vm13 = vweird.f32 %v622_v1  ;;  %vm640_vm15 = vweird.f32 %v623_v6 }
 0x5b5   :  { %983 = vrsqrt.f32 %v623_v6 }
 0x5b6   :  { %v739_v35 = vmul.f32 2.0, %v737_v54 }
 0x5b7   :  { %v749_v21 = vpop.permute.xlu0 %748 }
 0x5b8   :  { %v741_v41 = vadd.f32 %v739_v35, %v706_v34  ;;  %v752_v42 = vmul.f32 %v749_v21, %v1266_v38  ;;  %v781_v21 = vmul.f32 %v775_v18, %v1251_v24 }
 0x5ba   :  { %v982_v49 = vpop.eup %981  ;;  %v765_v59 = vadd.f32 %v761_v56, %v752_v42 }
 0x5bb   :  { %v984_v52 = vpop.eup %983  ;;  %v625_v53 = vmul.f32 %v982_v49, %v622_v1  ;;  %vm631_vm11 = vweird.f32 %v982_v49  ;;  %v791_v54 = vpop.permute.xlu1 %790 }
 0x5bc   :  { %v635_v55 = vmul.f32 %v984_v52, %v623_v6  ;;  %vm641_vm12 = vweird.f32 %v984_v52  ;;  %vm632_vm14 = vmor %vm630_vm13, %vm631_vm11 }
 0x5bd   :  { %v626_v62 = vmul.f32 %v982_v49, %v625_v53 }
 0x5be   :  { %v636_v51 = vmul.f32 %v984_v52, %v635_v55 }
 0x5bf   :  { %v759_v15 = vpop.permute.xlu0 %758  ;;  %v627_v46 = vmul.f32 0.5, %v626_v62 }
 0x5c0   :  { %v764_v27 = vadd.f32 %v759_v15, %v751_v43  ;;  %v637_v5 = vmul.f32 0.5, %v636_v51 }
 0x5c1   :  { %v628_v11 = vsub.f32 1.5, %v627_v46 }
 0x5c2   :  { %v638_v13 = vsub.f32 1.5, %v637_v5 }
 0x5c3   :  { %v629_v17 = vmul.f32 %v982_v49, %v628_v11 }
 0x5c4   :  { %v639_v16 = vmul.f32 %v984_v52, %v638_v13 }
 0x5c5   :  { %v1477_v33 = vsel %vm632_vm14, %v982_v49, %v629_v17 }
 0x5c6   :  { %v803_v22 = vmul.f32 %v1477_v33, %v1477_v33  ;;  %v822_v6 = vmul.f32 2.0, %v1477_v33 }
 0x5c7   :  { %v324_v32 = vpop.permute.xlu0 %323 }
 0x5c8   :  { %v330_v48 = vsel %vm60_vm0, %v324_v32, 0.0 }
 0x5c9   :  { %331 = vadd.xlane.f32.xlu2 %v330_v48 }
 0x5cf   :  { %v508_v50 = vpop.permute.xlu0 %507 }
 0x5d0   :  { %v514_v29 = vsel %vm60_vm0, %v508_v50, 0.0  ;;  %vm642_vm0 = vmor %vm640_vm15, %vm641_vm12 }
 0x5d1   :  { %515 = vadd.xlane.f32.xlu1 %v514_v29 }
 0x5d7   :  { %v769_v57 = vpop.permute.xlu0 %768 }
 0x5d8   :  { %v771_v2 = vadd.f32 %v769_v57, %v764_v27  ;;  %v772_v60 = vadd.f32 %v769_v57, %v765_v59 }
 0x5da   :  { %v807_v44 = vmul.f32 %v805_v0, %v771_v2  ;;  %v808_v58 = vmul.f32 %v806_v3, %v772_v60 }
 0x5dc   :  { %v809_v47 = vsub.f32 %v741_v41, %v807_v44  ;;  %v810_v7 = vsub.f32 %v1443_v4, %v808_v58  ;;  %v1479_v4 = vsel %vm642_vm0, %v984_v52, %v639_v16 }
 0x5dd   :  { %v804_v26 = vmul.f32 %v1479_v4, %v1479_v4  ;;  %v823_v32 = vmul.f32 2.0, %v1479_v4 }
 0x5df   :  { %v789_v40 = vpop.permute.xlu0 %788 }
 0x5e0   :  { %v794_v43 = vadd.f32 %v789_v40, %v781_v21 }
 0x5e1   :  { %662 = vperm.xlu2 %945, %v1474_v14  }
 0x5e6   :  { %v329_v34 = vpop.xlane.xlu1 %328 }
 0x5e7   :  { %v814_v19 = vpop.permute.xlu0 %813 }
 0x5e8   :  { %v816_v37 = vmul.f32 %v814_v19, %v1455_v12  ;;  %v817_v36 = vmul.f32 %v814_v19, %v1459_v8  ;;  %v646_v12 = vmul.f32 %v1474_v14, %v1288_v61  ;;  %v779_v8 = vpop.permute.xlu2 %778 }
 0x5e9   :  { %946 = vset.pattern.permute.xlu2 %v1025_v23  ;;  %v782_v35 = vmul.f32 %v779_v8, %v1266_v38 }
 0x5ea   :  { %v818_v28 = vadd.f32 %v816_v37, %v809_v47  ;;  %v819_v39 = vadd.f32 %v817_v36, %v810_v7  ;;  %677 = vperm.xlu2 %946, %v1474_v14  }
 0x5eb   :  { %v795_v42 = vadd.f32 %v791_v54, %v782_v35 }
 0x5ec   :  { %v820_v30 = vmul.f32 %v818_v28, %v803_v22  ;;  %v821_v31 = vmul.f32 %v819_v39, %v804_v26 }
 0x5ef   :  { %v1494_v41 = vpop.f32.mrf.mxu2 }
 0x5f0   :  { %v799_v15 = vpop.permute.xlu2 %798  ;;  %v647_v1 = vmul.f32 %v1494_v41, %v1295_v63 }
 0x5f1   :  { %v802_v25 = vadd.f32 %v799_v15, %v795_v42  ;;  %v801_v61 = vadd.f32 %v799_v15, %v794_v43 }
 0x5f2   :  { %650 = vrot.lane.b32.xlu2 %v646_v12, %s1017_s17 }
 0x5f3   :  { %947 = vset.pattern.permute.xlu2 %v1024_v45 }
 0x5f8   :  { %v840_v55 = vpop.permute.xlu2 %839 }
 0x5fa   :  { %667 = vperm.xlu2 %947, %v1494_v41  }
 0x5fe   :  { %v827_v27 = vpop.permute.xlu1 %826 }
 0x5ff   :  { %v829_v9 = vmul.f32 %v827_v27, %v1449_v10  ;;  %v830_v45 = vmul.f32 %v827_v27, %v1451_v20 }
 0x601   :  { %v831_v48 = vsub.f32 %v801_v61, %v829_v9  ;;  %v832_v49 = vsub.f32 %v802_v25, %v830_v45 }
 0x602   :  { %652 = vrot.lane.b32.xlu2 %v647_v1, %s1017_s17  ;;  %s1027_s17 = smov 128  }
 0x603   :  { %v833_v50 = vmul.f32 %v831_v48, %v822_v6  ;;  %v834_v52 = vmul.f32 %v832_v49, %v823_v32  ;;  %948 = vset.pattern.permute.xlu2 %v1025_v23 }
 0x605   :  { %v835_v29 = vadd.f32 %v833_v50, %v820_v30  ;;  %v836_v53 = vadd.f32 %v834_v52, %v821_v31 }
 0x607   :  { %v842_v56 = vadd.f32 %v840_v55, %v835_v29  ;;  %v843_v2 = vadd.f32 %v840_v55, %v836_v53 }
 0x609   :  { %v844_v59 = vmul.f32 %v842_v56, %v329_v34 }
 0x60a   :  { %681 = vperm.xlu2 %948, %v1494_v41  }
 0x60b   :  { %v846_v63 = vmax.f32 %v844_v59, 1e-16 }
 0x60d   :  { %985 = vrsqrt.f32 %v846_v63  ;;  %vm854_vm3 = vweird.f32 %v846_v63 }
 0x612   :  { %v513_v46 = vpop.xlane.xlu0 %512 }
 0x613   :  { %v986_v51 = vpop.eup %985  ;;  %v644_v47 = vmul.f32 %v513_v46, %v1251_v24 }
 0x614   :  { %v849_v0 = vmul.f32 %v986_v51, %v846_v63  ;;  %vm855_vm1 = vweird.f32 %v986_v51 }
 0x615   :  { %vm856_vm4 = vmor %vm854_vm3, %vm855_vm1 }
 0x616   :  { %v850_v58 = vmul.f32 %v986_v51, %v849_v0 }
 0x618   :  { %v851_v5 = vmul.f32 0.5, %v850_v58 }
 0x61a   :  { %v852_v11 = vsub.f32 1.5, %v851_v5 }
 0x61c   :  { %v853_v37 = vmul.f32 %v986_v51, %v852_v11 }
 0x61e   :  { %v857_v24 = vsel %vm856_vm4, %v986_v51, %v853_v37 }
 0x63c   :  { %v332_v57 = vpop.xlane.xlu2 %331 }
 0x63d   :  { %v845_v60 = vmul.f32 %v843_v2, %v332_v57 }
 0x63f   :  { %v847_v44 = vmax.f32 %v845_v60, 1e-16 }
 0x641   :  { %987 = vrsqrt.f32 %v847_v44  ;;  %vm864_vm6 = vweird.f32 %v847_v44 }
 0x644   :  { %v663_v62 = vpop.permute.xlu2 %662  ;;  %v516_v39 = vpop.xlane.xlu1 %515 }
 0x645   :  { %v670_v17 = vmul.f32 %v663_v62, %v1449_v10  ;;  %v645_v10 = vmul.f32 %v516_v39, %v1266_v38 }
 0x647   :  { %v988_v13 = vpop.eup %987 }
 0x648   :  { %v859_v19 = vmul.f32 %v988_v13, %v847_v44  ;;  %vm865_vm5 = vweird.f32 %v988_v13 }
 0x649   :  { %vm866_vm7 = vmor %vm864_vm6, %vm865_vm5 }
 0x64a   :  { %v860_v26 = vmul.f32 %v988_v13, %v859_v19 }
 0x64c   :  { %v678_v3 = vpop.permute.xlu2 %677  ;;  %v861_v30 = vmul.f32 0.5, %v860_v26 }
 0x64e   :  { %v862_v54 = vsub.f32 1.5, %v861_v30 }
 0x650   :  { %v863_v34 = vmul.f32 %v988_v13, %v862_v54 }
 0x652   :  { %v867_v43 = vsel %vm866_vm7, %v988_v13, %v863_v34 }
 0x654   :  { %v651_v7 = vpop.permute.xlu2 %650 }
 0x655   :  { %v656_v40 = vadd.f32 %v651_v7, %v644_v47 }
 0x657   :  { %v658_v16 = vadd.f32 %v656_v40, %v1474_v14 }
 0x659   :  { %v672_v18 = vsub.f32 %v658_v16, %v670_v17 }
 0x65b   :  { %v674_v36 = vmul.f32 %v672_v18, %v1477_v33 }
 0x65c   :  { %v668_v23 = vpop.permute.xlu2 %667 }
 0x65d   :  { %v684_v22 = vadd.f32 %v678_v3, %v674_v36  ;;  %v671_v12 = vmul.f32 %v668_v23, %v1451_v20 }
 0x65f   :  { %v868_v28 = vmul.f32 %v857_v24, %v684_v22 }
 0x661   :  { %872 = vrot.lane.b32.xlu0 %v868_v28, %s1018_s0 }
 0x664   :  { %v653_v14 = vpop.permute.xlu2 %652 }
 0x665   :  { %v657_v31 = vadd.f32 %v653_v14, %v645_v10 }
 0x667   :  { %v659_v33 = vadd.f32 %v657_v31, %v1494_v41 }
 0x669   :  { %v673_v8 = vsub.f32 %v659_v33, %v671_v12 }
 0x66b   :  { %v675_v35 = vmul.f32 %v673_v8, %v1479_v4 }
 0x66c   :  { %v682_v21 = vpop.permute.xlu2 %681 }
 0x66d   :  { %v685_v42 = vadd.f32 %v682_v21, %v675_v35 }
 0x66f   :  { %v869_v15 = vmul.f32 %v867_v43, %v685_v42 }
 0x671   :  { %874 = vrot.lane.b32.xlu1 %v869_v15, %s1018_s0 }
 0x6d3   :  { %v873_v38 = vpop.permute.xlu0 %872 }
 0x6d4   :  { %v878_v27 = vsel %vm134_vm2, %v873_v38, 0.0 }
 0x6d5   :  { %880 = vst [vmem:[#allocation2] sm:$0xff] %v878_v27 }
 0x6e3   :  { %v875_v20 = vpop.permute.xlu1 %874 }
 0x6e4   :  { %v879_v4 = vsel %vm134_vm2, %v875_v20, 0.0 }
 0x6e5   :  { %881 = vst [vmem:[#allocation2 + $0x8] sm:$0xff] %v879_v4 }
 0x6e6   :  { %894 = dma.vmem_to_hbm [thread:$0]  %s887_s15, 256, %s889_s7, [#allocation3], %s1027_s17, %s1027_s17, %s1028_s18  }
 0x6e7   :  { %1013 = dma.done.wait [#allocation3], 256  }
 0x6e8   :  { %1014 = vsyncadd [#allocation3], 4294967040 }
 0x6e9   :  { %899 = vsyncpa [#allocation3], 1 }

// kernel: tpu_custom_call.1
= control target key start
LH: loop header
LB: loop body
LE: loop exit
PB: predicated region body
PF: predicated region fallthrough
CT: control target
= control target key end

     0   :  { %s1520_s0 = inlined_call_operand.vmem [shape: bf16[16,32], index: 0, kind: input, shape index: {}]   ;;  %s1521_s1 = inlined_call_operand.vmem [shape: bf16[32,96], index: 1, kind: input, shape index: {}]   ;;  %s1522_s2 = inlined_call_operand.vmem [shape: f32[96,14], index: 2, kind: input, shape index: {}]   ;;  %s1523_s3 = inlined_call_operand.vmem [shape: f32[7,32], index: 3, kind: input, shape index: {}]   ;;  %s1524_s4 = inlined_call_operand.vmem [shape: f32[32,31], index: 4, kind: input, shape index: {}]   ;;  %s1525_s5 = inlined_call_operand.vmem [shape: f32[32,16], index: 5, kind: input, shape index: {}]   ;;  %s1526_s6 = inlined_call_operand.vmem [shape: f32[17,7], index: 6, kind: input, shape index: {}]   ;;  %s1527_s7 = inlined_call_operand.vmem [shape: f32[3,32], index: 7, kind: input, shape index: {}]   ;;  %s1528_s8 = inlined_call_operand.hbm [shape: f32[16,128], index: 8, kind: output, shape index: {}]  }
   0x1   :  { %v924_v0 = vld [vmem:[%s1521_s1 + $0x8] sm:$0xff]  ;;  %v89_v1 = vld [vmem:[%s1522_s2 + $0x58] sm:$0xff]  ;;  %v88_v2 = vld [vmem:[%s1522_s2 + $0x50] sm:$0xff] }
   0x2   :  { %70 = vmatpush.bf16.msra.mxu0 %v924_v0  ;;  %v923_v3 = vld [vmem:[%s1521_s1] sm:$0xff]  ;;  %101 = vmatpush.msra.mxu1 %v89_v1  ;;  %v87_v4 = vld [vmem:[%s1522_s2 + $0x48] sm:$0xff] }
   0x3   :  { %v922_v5 = vld [vmem:[%s1520_s0] sm:$0xff] }
   0x4   :  { %102 = vmatpush.msra.mxu1 %v88_v2  ;;  %v86_v6 = vld [vmem:[%s1522_s2 + $0x40] sm:$0xff] }
   0x5   :  { %13 = vsyncpa [#allocation3], 0  ;;  %vm60_vm0 = vcmask 261120   ;;  %v85_v7 = vld [vmem:[%s1522_s2 + $0x38] sm:$0xff]  ;;  %v84_v8 = vld [vmem:[%s1522_s2 + $0x30] sm:$0xff]  ;;  %vm90_vm1 = vcmask 785408  }
   0x6   :  { %71 = vmatpush.bf16.msra.mxu0 %v923_v3  ;;  %103 = vmatpush.msra.mxu1 %v87_v4  ;;  %v83_v9 = vld [vmem:[%s1522_s2 + $0x28] sm:$0xff]  ;;  %v82_v10 = vld [vmem:[%s1522_s2 + $0x20] sm:$0xff]  ;;  %v81_v11 = vld [vmem:[%s1522_s2 + $0x18] sm:$0xff]  ;;  %s1015_s12 = smov 96   ;;  %vm134_vm2 = vcmask 56320   ;;  %s1016_s14 = smov 64  }
   0x7   :  { %v80_v12 = vld [vmem:[%s1522_s2 + $0x10] sm:$0xff]  ;;  %v79_v13 = vld [vmem:[%s1522_s2 + $0x8] sm:$0xff]  ;;  %v78_v14 = vld [vmem:[%s1522_s2] sm:$0xff]  ;;  %vm180_vm3 = vcmask 1046528   ;;  %s1017_s17 = smov 7   ;;  %s1023_s2 = smov 114  }
   0x8   :  { %104 = vmatpush.msra.mxu1 %v86_v6  ;;  %v1143_v27 = vld [vmem:[%s1527_s7] sm:$0x7]  ;;  %s888_s7 = sshll.u32 %s1528_s8, 4  ;;  %s1028_s18 = smov 8   ;;  %s889_s7 = int_to_ptr.hbm [resolvable:$true] %s888_s7 }
   0x9   :  { %912 = vmatmul.msk.bf16.vlgmr.msra.gmra.mxu0 %vm60_vm0, %v922_v5  ;;  %v219_v28 = vperm.slane %v1143_v27, 0  ;;  %v173_v29 = vld [vmem:[%s1523_s3] sm:$0x7f] }
   0xa   :  { %105 = vmatpush.msra.mxu1 %v85_v7  ;;  %915 = vmatpush.msk.msra.mxu2 %vm180_vm3, %v173_v29  ;;  %v1159_v46 = vld [vmem:[%s1526_s6] sm:$0xff]  ;;  %v394_v29 = vld [vmem:[%s1524_s4 + $0x8] sm:$0xff] }
   0xb   :  { %v1162_v47 = vperm.slane %v1159_v46, 0  ;;  %v32_v48 = vld [vmem:[%s1520_s0] sm:$0xff]   ;;  %s1018_s0 = smov 121  }
   0xc   :  { %106 = vmatpush.msra.mxu1 %v84_v8  ;;  %v34_v49 = vunpack.c.h.bf16 %v32_v48  ;;  %v33_v50 = vunpack.c.l.bf16 %v32_v48  ;;  %v1019_v48 = vmov 32.0  }
   0xe   :  { %107 = vmatpush.msra.mxu1 %v83_v9 }
  0x10   :  { %108 = vmatpush.msra.mxu1 %v82_v10 }
  0x12   :  { %109 = vmatpush.msra.mxu1 %v81_v11 }
  0x14   :  { %110 = vmatpush.msra.mxu1 %v80_v12 }
  0x16   :  { %111 = vmatpush.msra.mxu1 %v79_v13 }
  0x18   :  { %112 = vmatpush.msra.mxu1 %v78_v14 }
  0x86   :  { %v1120_v15 = vpop.f32.mrf.mxu0 }
  0x87   :  { %120 = vrot.lane.b32.xlu0 %v1120_v15, %s1015_s12  ;;  %913 = vmatmul.msk.f32.vlgmr.msra.gmra.mxu1 %vm90_vm1, %v1120_v15 }
  0x8e   :  { %v1124_v16 = vpop.f32.mrf.mxu0 }
  0x8f   :  { %122 = vrot.lane.b32.xlu0 %v1124_v16, %s1015_s12  ;;  %914 = vmatmul.msk.f32.gmra.mxu1 %vm90_vm1, %v1124_v16 }
  0xf9   :  { %v121_v17 = vpop.permute.xlu0 %120 }
  0xfa   :  { %v126_v18 = vmul.f32 %v121_v17, %v1120_v15 }
  0xfc   :  { %v128_v19 = vsel %vm60_vm0, %v126_v18, 0.0 }
  0xfd   :  { %129 = vadd.xlane.f32.xlu1 %v128_v19 }
 0x101   :  { %v123_v20 = vpop.permute.xlu0 %122 }
 0x102   :  { %v127_v21 = vmul.f32 %v123_v20, %v1124_v16 }
 0x104   :  { %v1131_v22 = vpop.f32.mrf.mxu1  ;;  %v131_v23 = vsel %vm60_vm0, %v127_v21, 0.0 }
 0x105   :  { %132 = vadd.xlane.f32.xlu2 %v131_v23  ;;  %v135_v24 = vsel %vm134_vm2, %v1131_v22, -inf }
 0x106   :  { %136 = vmax.xlane.f32.xlu1 %v135_v24 }
 0x10c   :  { %v1136_v25 = vpop.f32.mrf.mxu1 }
 0x10d   :  { %v138_v26 = vsel %vm134_vm2, %v1136_v25, -inf }
 0x10e   :  { %139 = vmax.xlane.f32.xlu2 %v138_v26  ;;  %v396_v26 = vld [vmem:[%s1524_s4 + $0x18] sm:$0xff] }
 0x10f   :  { %417 = vmatpush.msra.mxu3 %v396_v26 }
 0x11f   :  { %221 = vrot.lane.b32.xlu1 %v219_v28, %s1016_s14  ;;  %v395_v28 = vld [vmem:[%s1524_s4 + $0x10] sm:$0xff] }
 0x120   :  { %418 = vmatpush.msra.mxu3 %v395_v28 }
 0x122   :  { %419 = vmatpush.msra.mxu3 %v394_v29 }
 0x126   :  { %228 = vrot.lane.b32.xlu2 %v33_v50, %s1016_s14 }
 0x170   :  { %v130_v30 = vpop.xlane.xlu1 %129 }
 0x178   :  { %v133_v31 = vpop.xlane.xlu2 %132 }
 0x179   :  { %v137_v32 = vpop.xlane.xlu1 %136 }
 0x17a   :  { %v141_v33 = vmax.f32 %v130_v30, %v137_v32 }
 0x17c   :  { %v143_v34 = vsub.f32 %v130_v30, %v141_v33  ;;  %v149_v35 = vsub.f32 %v1131_v22, %v141_v33  ;;  %v393_v30 = vld [vmem:[%s1524_s4] sm:$0xff] }
 0x17d   :  { %420 = vmatpush.msra.mxu3 %v393_v30 }
 0x17e   :  { %v151_v36 = vmul.f32 1.442695, %v149_v35  ;;  %v145_v53 = vmul.f32 1.442695, %v143_v34  ;;  %v310_v34 = vperm.slane %v1143_v27, 2 }
 0x180   :  { %951 = vpow2.f32 %v151_v36 }
 0x181   :  { %v140_v37 = vpop.xlane.xlu2 %139 }
 0x182   :  { %v142_v38 = vmax.f32 %v133_v31, %v140_v37  ;;  %v1210_v37 = vperm.slane %v1143_v27, 1 }
 0x184   :  { %v144_v39 = vsub.f32 %v133_v31, %v142_v38  ;;  %v150_v40 = vsub.f32 %v1136_v25, %v142_v38 }
 0x186   :  { %v153_v41 = vmul.f32 1.442695, %v150_v40  ;;  %v952_v42 = vpop.eup %951  ;;  %v147_v55 = vmul.f32 1.442695, %v144_v39 }
 0x187   :  { %916 = vmatmul.msk.f32.vlgmr.msra.gmra.mxu2 %vm134_vm2, %v952_v42  ;;  %v155_v43 = vsel %vm134_vm2, %v952_v42, 0.0 }
 0x188   :  { %953 = vpow2.f32 %v153_v41  ;;  %156 = vadd.xlane.f32.xlu0 %v155_v43  ;;  %v360_v43 = vperm.slane %v1159_v46, 1 }
 0x189   :  { %955 = vpow2.f32 %v145_v53  ;;  %v229_v63 = vpop.permute.xlu2 %228 }
 0x18a   :  { %957 = vpow2.f32 %v147_v55 }
 0x18e   :  { %v954_v44 = vpop.eup %953 }
 0x18f   :  { %917 = vmatmul.msk.f32.gmra.mxu2 %vm134_vm2, %v954_v44  ;;  %v158_v45 = vsel %vm134_vm2, %v954_v44, 0.0  ;;  %v956_v57 = vpop.eup %955 }
 0x190   :  { %159 = vadd.xlane.f32.xlu1 %v158_v45  ;;  %v958_v60 = vpop.eup %957  ;;  %v171_v3 = vmul.f32 %v956_v57, %v1120_v15 }
 0x191   :  { %v222_v54 = vpop.permute.xlu1 %221  ;;  %v172_v11 = vmul.f32 %v958_v60, %v1124_v16 }
 0x19c   :  { %335 = vrot.lane.b32.xlu0 %v1162_v47, %s1017_s17 }
 0x1a9   :  { %230 = vrot.lane.b32.xlu1 %v34_v49, %s1016_s14 }
 0x1fb   :  { %v157_v56 = vpop.xlane.xlu0 %156 }
 0x1fc   :  { %v161_v58 = vadd.f32 %v956_v57, %v157_v56 }
 0x1fe   :  { %959 = vrcp.f32 %v161_v58 }
 0x203   :  { %v160_v59 = vpop.xlane.xlu1 %159 }
 0x204   :  { %v162_v61 = vadd.f32 %v958_v60, %v160_v59  ;;  %v960_v62 = vpop.eup %959 }
 0x205   :  { %v165_v0 = vmul.f32 %v960_v62, %v161_v58 }
 0x206   :  { %961 = vrcp.f32 %v162_v61 }
 0x207   :  { %v167_v1 = vsub.f32 2.0, %v165_v0 }
 0x209   :  { %v169_v6 = vmul.f32 %v960_v62, %v167_v1 }
 0x20a   :  { %v201_v51 = vpop.f32.mrf.mxu2 }
 0x20b   :  { %209 = vrot.lane.b32.xlu2 %v201_v51, %s1016_s14 }
 0x20c   :  { %v962_v2 = vpop.eup %961 }
 0x20d   :  { %v166_v5 = vmul.f32 %v962_v2, %v162_v61 }
 0x20e   :  { %v336_v23 = vpop.permute.xlu0 %335 }
 0x20f   :  { %v168_v9 = vsub.f32 2.0, %v166_v5  ;;  %v1185_v24 = vmax.f32 %v1136_v25, %v336_v23  ;;  %v338_v45 = vmax.f32 %v1131_v22, %v336_v23 }
 0x211   :  { %v170_v14 = vmul.f32 %v962_v2, %v168_v9  ;;  %v1020_v2 = vmov 28  }
 0x212   :  { %v204_v52 = vpop.f32.mrf.mxu2  ;;  %939 = vset.pattern.permute.xlu2 %v1020_v2  ;;  %940 = vset.pattern.permute.xlu0 %v1020_v2 }
 0x213   :  { %211 = vrot.lane.b32.xlu2 %v204_v52, %s1016_s14 }
 0x21b   :  { %v231_v19 = vpop.permute.xlu1 %230 }
 0x265   :  { %v210_v4 = vpop.permute.xlu2 %209 }
 0x266   :  { %v215_v7 = vadd.f32 %v210_v4, %v171_v3 }
 0x268   :  { %v217_v8 = vmul.f32 %v215_v7, %v169_v6  ;;  %v340_v7 = vsub.f32 %v1131_v22, %v338_v45 }
 0x26a   :  { %v224_v10 = vadd.f32 %v222_v54, %v217_v8  ;;  %v341_v8 = vsub.f32 %v1136_v25, %v1185_v24 }
 0x26c   :  { %v234_v12 = vadd.f32 %v229_v63, %v224_v10  ;;  %v342_v10 = vmul.f32 1.442695, %v340_v7 }
 0x26d   :  { %v212_v13 = vpop.permute.xlu2 %211 }
 0x26e   :  { %v216_v17 = vadd.f32 %v212_v13, %v172_v11  ;;  %238 = vrot.lane.b32.xlu2 %v234_v12, %s1016_s14  ;;  %v344_v11 = vmul.f32 1.442695, %v341_v8 }
 0x270   :  { %v218_v18 = vmul.f32 %v216_v17, %v170_v14 }
 0x272   :  { %v225_v20 = vadd.f32 %v222_v54, %v218_v18 }
 0x274   :  { %v1176_v21 = vadd.f32 %v231_v19, %v225_v20 }
 0x276   :  { %397 = vrot.lane.b32.xlu2 %v1120_v15, %s1016_s14  ;;  %240 = vrot.lane.b32.xlu1 %v1176_v21, %s1016_s14 }
 0x27e   :  { %399 = vrot.lane.b32.xlu1 %v1124_v16, %s1016_s14 }
 0x286   :  { %350 = vrot.lane.b32.xlu1 %v1185_v24, %s1018_s0 }
 0x2c8   :  { %v239_v31 = vpop.permute.xlu2 %238 }
 0x2c9   :  { %v244_v32 = vsel %vm60_vm0, %v239_v31, 0.0 }
 0x2ca   :  { %245 = vadd.xlane.f32.xlu0 %v244_v32 }
 0x2d0   :  { %v1202_v33 = vpop.permute.xlu2 %397 }
 0x2d1   :  { %918 = vmatmul.msk.f32.vlgmr.msra.gmra.mxu3 %vm60_vm0, %v1202_v33 }
 0x2de   :  { %312 = vrot.lane.b32.xlu0 %v310_v34, %s1016_s14 }
 0x2e8   :  { %v241_v35 = vpop.permute.xlu1 %240 }
 0x2e9   :  { %v247_v36 = vsel %vm60_vm0, %v241_v35, 0.0  ;;  %v469_v35 = vmul.f32 %v1120_v15, %v1120_v15 }
 0x2ea   :  { %248 = vadd.xlane.f32.xlu2 %v247_v36 }
 0x2f0   :  { %v400_v38 = vpop.permute.xlu1 %399 }
 0x2f1   :  { %v468_v39 = vmul.f32 %v400_v38, %v1210_v37  ;;  %919 = vmatmul.msk.f32.gmra.mxu3 %vm60_vm0, %v400_v38 }
 0x2f3   :  { %v486_v3 = vmul.f32 %v468_v39, %v468_v39 }
 0x2f5   :  { %v490_v4 = vsel %vm60_vm0, %v486_v3, 0.0 }
 0x2f8   :  { %v351_v40 = vpop.permute.xlu1 %350 }
 0x2f9   :  { %v355_v41 = vsub.f32 %v1162_v47, %v351_v40 }
 0x2fb   :  { %v358_v42 = vmul.f32 1.442695, %v355_v41 }
 0x2fd   :  { %963 = vpow2.f32 %v358_v42 }
 0x2fe   :  { %965 = vrcp.f32 %v1019_v48 }
 0x302   :  { %305 = vrot.lane.b32.xlu2 %v1210_v37, %s1016_s14 }
 0x303   :  { %v1218_v44 = vpop.eup %963 }
 0x304   :  { %v362_v27 = vmul.f32 %v1218_v44, %v360_v43  ;;  %v966_v49 = vpop.eup %965 }
 0x305   :  { %v251_v50 = vmul.f32 32.0, %v966_v49  ;;  %vm255_vm4 = vweird.f32 %v966_v49 }
 0x306   :  { %367 = vrot.lane.b32.xlu0 %v362_v27, %s1017_s17 }
 0x307   :  { %v252_v51 = vsub.f32 1.0, %v251_v50 }
 0x309   :  { %v253_v52 = vmul.f32 %v966_v49, %v252_v51 }
 0x30a   :  { %348 = vrot.lane.b32.xlu2 %v338_v45, %s1018_s0 }
 0x30b   :  { %v254_v53 = vadd.f32 %v966_v49, %v253_v52 }
 0x30d   :  { %v1224_v54 = vsel %vm255_vm4, %v966_v49, %v254_v53 }
 0x33d   :  { %v246_v55 = vpop.xlane.xlu0 %245 }
 0x33e   :  { %v257_v56 = vmul.f32 %v1224_v54, %v246_v55 }
 0x340   :  { %v1227_v57 = vsub.f32 %v234_v12, %v257_v56 }
 0x342   :  { %v261_v58 = vmul.f32 %v1227_v57, %v1227_v57 }
 0x344   :  { %265 = vrot.lane.b32.xlu1 %v261_v58, %s1016_s14  ;;  %v597_v58 = vperm.slane %v1159_v46, 6 }
 0x350   :  { %v1248_v9 = vpop.permute.xlu0 %312 }
 0x354   :  { %v1242_v6 = vpop.f32.mrf.mxu3 }
 0x35d   :  { %v249_v59 = vpop.xlane.xlu2 %248 }
 0x35e   :  { %v258_v30 = vmul.f32 %v1224_v54, %v249_v59 }
 0x360   :  { %v1256_v32 = vsub.f32 %v1176_v21, %v258_v30 }
 0x362   :  { %v262_v34 = vmul.f32 %v1256_v32, %v1256_v32 }
 0x365   :  { %v1232_v60 = vpop.permute.xlu2 %305 }
 0x36d   :  { %v349_v61 = vpop.permute.xlu2 %348 }
 0x36e   :  { %v354_v62 = vsub.f32 %v1162_v47, %v349_v61 }
 0x370   :  { %v356_v63 = vmul.f32 1.442695, %v354_v62 }
 0x372   :  { %967 = vpow2.f32 %v356_v63 }
 0x373   :  { %969 = vpow2.f32 %v342_v10  ;;  %v470_v10 = vmul.f32 %v1124_v16, %v1124_v16 }
 0x374   :  { %971 = vpow2.f32 %v344_v11  ;;  %v467_v11 = vmul.f32 %v1202_v33, %v1210_v37 }
 0x378   :  { %v1235_v0 = vpop.eup %967  ;;  %v368_v12 = vpop.permute.xlu0 %367 }
 0x379   :  { %v361_v1 = vmul.f32 %v1235_v0, %v360_v43  ;;  %v970_v13 = vpop.eup %969 }
 0x37a   :  { %v972_v14 = vpop.eup %971 }
 0x37b   :  { %365 = vrot.lane.b32.xlu2 %v361_v1, %s1017_s17  ;;  %v372_v18 = vadd.f32 %v972_v14, %v368_v12  ;;  %v543_v1 = vperm.slane %v1159_v46, 2 }
 0x383   :  { %497 = vrot.lane.b32.xlu2 %v468_v39, %s1016_s14 }
 0x3ac   :  { %491 = vadd.xlane.f32.xlu2 %v490_v4  ;;  %v431_v4 = vld [vmem:[%s1525_s5 + $0x18] sm:$0xff] }
 0x3ad   :  { %454 = vmatpush.msrb.mxu2 %v431_v4 }
 0x3b6   :  { %v266_v5 = vpop.permute.xlu1 %265 }
 0x3b7   :  { %v271_v47 = vsel %vm60_vm0, %v266_v5, 0.0  ;;  %v429_v5 = vld [vmem:[%s1525_s5 + $0x8] sm:$0xff] }
 0x3b8   :  { %272 = vadd.xlane.f32.xlu1 %v271_v47  ;;  %v428_v47 = vld [vmem:[%s1525_s5] sm:$0xff] }
 0x3c4   :  { %533 = vperm.xlu2 %939, %v1242_v6  }
 0x3d5   :  { %v366_v17 = vpop.permute.xlu2 %365 }
 0x3d6   :  { %v371_v19 = vadd.f32 %v970_v13, %v366_v17 }
 0x3d8   :  { %973 = vrcp.f32 %v371_v19 }
 0x3d9   :  { %975 = vrcp.f32 %v372_v18 }
 0x3dd   :  { %v1264_v36 = vpop.permute.xlu2 %497 }
 0x3de   :  { %v974_v20 = vpop.eup %973 }
 0x3df   :  { %v375_v23 = vmul.f32 %v974_v20, %v371_v19  ;;  %v976_v22 = vpop.eup %975 }
 0x3e0   :  { %v376_v28 = vmul.f32 %v976_v22, %v372_v18 }
 0x3e1   :  { %v377_v26 = vsub.f32 2.0, %v375_v23 }
 0x3e2   :  { %v378_v29 = vsub.f32 2.0, %v376_v28 }
 0x3e3   :  { %v379_v25 = vmul.f32 %v974_v20, %v377_v26 }
 0x3e4   :  { %v380_v31 = vmul.f32 %v976_v22, %v378_v29  ;;  %v1021_v29 = vmov 29  }
 0x3e5   :  { %385 = vrot.lane.b32.xlu0 %v379_v25, %s1018_s0  ;;  %v1251_v24 = vmul.f32 %v970_v13, %v379_v25  ;;  %941 = vset.pattern.permute.xlu2 %v1021_v29 }
 0x3e6   :  { %v1266_v38 = vmul.f32 %v972_v14, %v380_v31  ;;  %v485_v14 = vmul.f32 %v467_v11, %v467_v11 }
 0x3e7   :  { %v517_v33 = vmul.f32 %v1251_v24, %v1251_v24 }
 0x3e8   :  { %v1270_v39 = vmul.f32 %v1266_v38, %v1266_v38  ;;  %v487_v17 = vsel %vm60_vm0, %v485_v14, 0.0 }
 0x3ed   :  { %387 = vrot.lane.b32.xlu0 %v380_v31, %s1018_s0 }
 0x3f5   :  { %267 = vrot.lane.b32.xlu0 %v262_v34, %s1016_s14 }
 0x3fd   :  { %473 = vrot.lane.b32.xlu0 %v469_v35, %s1016_s14 }
 0x41f   :  { %v492_v21 = vpop.xlane.xlu2 %491 }
 0x420   :  { %v1273_v40 = vmul.f32 %v1270_v39, %v492_v21 }
 0x427   :  { %v1322_v12 = vpop.permute.xlu2 %533 }
 0x42b   :  { %v273_v41 = vpop.xlane.xlu1 %272 }
 0x42c   :  { %v277_v42 = vmul.f32 %v273_v41, %v1224_v54 }
 0x42e   :  { %v279_v43 = vadd.f32 1e-05, %v277_v42 }
 0x430   :  { %977 = vrsqrt.f32 %v279_v43  ;;  %vm287_vm6 = vweird.f32 %v279_v43 }
 0x436   :  { %v978_v15 = vpop.eup %977 }
 0x437   :  { %v282_v27 = vmul.f32 %v978_v15, %v279_v43  ;;  %vm288_vm5 = vweird.f32 %v978_v15 }
 0x438   :  { %vm289_vm7 = vmor %vm287_vm6, %vm288_vm5 }
 0x439   :  { %v283_v45 = vmul.f32 %v978_v15, %v282_v27  ;;  %v565_v27 = vperm.slane %v1159_v46, 4 }
 0x43b   :  { %v284_v48 = vmul.f32 0.5, %v283_v45 }
 0x43d   :  { %v285_v49 = vsub.f32 1.5, %v284_v48  ;;  %v1022_v48 = vmov 30  }
 0x43e   :  { %943 = vset.pattern.permute.xlu1 %v1022_v48 }
 0x43f   :  { %v286_v50 = vmul.f32 %v978_v15, %v285_v49  ;;  %v688_v49 = vperm.slane %v1159_v46, 7 }
 0x441   :  { %v290_v51 = vsel %vm289_vm7, %v978_v15, %v286_v50 }
 0x442   :  { %v301_v52 = vmul.f32 %v290_v51, %v1227_v57  ;;  %v1369_v51 = vld [vmem:[%s1526_s6 + $0x8] sm:$0xff] }
 0x443   :  { %v753_v4 = vperm.slane %v1369_v51, 2  ;;  %v766_v14 = vperm.slane %v1369_v51, 3 }
 0x444   :  { %v308_v53 = vmul.f32 %v1232_v60, %v301_v52  ;;  %v726_v52 = vperm.slane %v1369_v51, 1 }
 0x446   :  { %v1279_v55 = vadd.f32 %v1248_v9, %v308_v53 }
 0x448   :  { %434 = vrot.lane.b32.xlu2 %v1279_v55, %s1016_s14  ;;  %v317_v56 = vmul.f32 %v1279_v55, %v1279_v55 }
 0x450   :  { %321 = vrot.lane.b32.xlu2 %v317_v56, %s1016_s14 }
 0x457   :  { %v386_v59 = vpop.permute.xlu0 %385 }
 0x458   :  { %v1288_v61 = vmul.f32 %v1235_v0, %v386_v59  ;;  %v701_v59 = vperm.slane %v1369_v51, 0 }
 0x45a   :  { %v598_v57 = vmul.f32 %v597_v58, %v1288_v61 }
 0x45c   :  { %602 = vrot.lane.b32.xlu2 %v598_v57, %s1017_s17 }
 0x45f   :  { %v388_v62 = vpop.permute.xlu0 %387 }
 0x460   :  { %v1295_v63 = vmul.f32 %v1218_v44, %v388_v62  ;;  %v430_v44 = vld [vmem:[%s1525_s5 + $0x10] sm:$0xff] }
 0x461   :  { %455 = vmatpush.msrb.mxu2 %v430_v44 }
 0x462   :  { %v545_v2 = vmul.f32 %v543_v1, %v1295_v63  ;;  %v520_v42 = vmul.f32 %v1295_v63, %v1295_v63  ;;  %v728_v53 = vmul.f32 %v726_v52, %v1295_v63  ;;  %v755_v44 = vmul.f32 %v753_v4, %v1295_v63 }
 0x463   :  { %456 = vmatpush.msrb.mxu2 %v429_v5 }
 0x464   :  { %550 = vrot.lane.b32.xlu2 %v545_v2, %s1017_s17  ;;  %v567_v45 = vmul.f32 %v565_v27, %v520_v42  ;;  %v690_v50 = vmul.f32 %v688_v49, %v520_v42  ;;  %v599_v2 = vmul.f32 %v597_v58, %v1295_v63  ;;  %v796_v58 = vperm.slane %v1369_v51, 5 }
 0x465   :  { %457 = vmatpush.msrb.mxu2 %v428_v47 }
 0x467   :  { %v268_v0 = vpop.permute.xlu0 %267 }
 0x468   :  { %v274_v3 = vsel %vm60_vm0, %v268_v0, 0.0  ;;  %v727_v0 = vmul.f32 %v726_v52, %v1288_v61 }
 0x469   :  { %275 = vadd.xlane.f32.xlu0 %v274_v3  ;;  %v578_v3 = vperm.slane %v1159_v46, 5 }
 0x46f   :  { %v474_v7 = vpop.permute.xlu0 %473 }
 0x470   :  { %v479_v8 = vsel %vm60_vm0, %v474_v7, 0.0  ;;  %v754_v7 = vmul.f32 %v753_v4, %v1288_v61 }
 0x471   :  { %480 = vadd.xlane.f32.xlu1 %v479_v8 }
 0x47d   :  { %475 = vrot.lane.b32.xlu0 %v470_v10, %s1016_s14 }
 0x48a   :  { %495 = vrot.lane.b32.xlu1 %v467_v11, %s1016_s14 }
 0x4a2   :  { %v435_v13 = vpop.permute.xlu2 %434 }
 0x4a3   :  { %920 = vmatmul.msk.f32.vlgmr.msrb.gmra.mxu2 %vm60_vm0, %v435_v13 }
 0x4aa   :  { %v322_v47 = vpop.permute.xlu2 %321 }
 0x4b4   :  { %488 = vadd.xlane.f32.xlu1 %v487_v17 }
 0x4b6   :  { %v1408_v8 = vpop.permute.xlu2 %602 }
 0x4be   :  { %v551_v13 = vpop.permute.xlu2 %550 }
 0x4cd   :  { %585 = vrot.lane.b32.xlu1 %v1242_v6, %s1017_s17 }
 0x4dc   :  { %v276_v16 = vpop.xlane.xlu0 %275 }
 0x4dd   :  { %v278_v18 = vmul.f32 %v276_v16, %v1224_v54 }
 0x4df   :  { %v280_v19 = vadd.f32 1e-05, %v278_v18 }
 0x4e1   :  { %979 = vrsqrt.f32 %v280_v19  ;;  %vm297_vm9 = vweird.f32 %v280_v19 }
 0x4e4   :  { %v481_v37 = vpop.xlane.xlu1 %480 }
 0x4e5   :  { %v1331_v20 = vmul.f32 %v517_v33, %v481_v37 }
 0x4e7   :  { %v980_v23 = vpop.eup %979 }
 0x4e8   :  { %v292_v22 = vmul.f32 %v980_v23, %v280_v19  ;;  %vm298_vm8 = vweird.f32 %v980_v23 }
 0x4e9   :  { %vm299_vm10 = vmor %vm297_vm9, %vm298_vm8 }
 0x4ea   :  { %v293_v26 = vmul.f32 %v980_v23, %v292_v22  ;;  %v327_v22 = vsel %vm60_vm0, %v322_v47, 0.0 }
 0x4ec   :  { %v294_v28 = vmul.f32 0.5, %v293_v26 }
 0x4ee   :  { %v295_v25 = vsub.f32 1.5, %v294_v28 }
 0x4ef   :  { %v476_v30 = vpop.permute.xlu0 %475 }
 0x4f0   :  { %v296_v31 = vmul.f32 %v980_v23, %v295_v25  ;;  %v482_v54 = vsel %vm60_vm0, %v476_v30, 0.0 }
 0x4f1   :  { %483 = vadd.xlane.f32.xlu0 %v482_v54 }
 0x4f2   :  { %v300_v34 = vsel %vm299_vm10, %v980_v23, %v296_v31  ;;  %v811_v23 = vperm.slane %v1369_v51, 6  ;;  %v593_v31 = vmul.f32 %v1242_v6, %v1251_v24 }
 0x4f3   :  { %v302_v35 = vmul.f32 %v300_v34, %v1256_v32  ;;  %v556_v32 = vperm.slane %v1159_v46, 3  ;;  %v783_v46 = vperm.slane %v1369_v51, 4 }
 0x4f5   :  { %v309_v21 = vmul.f32 %v1232_v60, %v302_v35  ;;  %v1349_v60 = vpop.f32.mrf.mxu3  ;;  %v785_v5 = vmul.f32 %v783_v46, %v1295_v63  ;;  %v784_v37 = vmul.f32 %v783_v46, %v1288_v61 }
 0x4f7   :  { %v1337_v41 = vadd.f32 %v1248_v9, %v309_v21  ;;  %v544_v9 = vmul.f32 %v543_v1, %v1288_v61  ;;  %v950_v21 = vld [vmem:[%s1526_s6 + $0x10] ss:$0 sm:$0xff]  ;;  %s1026_s6 = smov [#allocation2]  }
 0x4f8   :  { %s886_s15 = sshll.u32 %s1026_s6, 4  ;;  %s887_s15 = int_to_ptr.vmem [resolvable:$true] %s886_s15 }
 0x4f9   :  { %436 = vrot.lane.b32.xlu1 %v1337_v41, %s1016_s14  ;;  %v318_v10 = vmul.f32 %v1337_v41, %v1337_v41  ;;  %v502_v11 = vmul.f32 %v1264_v36, %v1337_v41 }
 0x4fc   :  { %v496_v43 = vpop.permute.xlu1 %495 }
 0x4fd   :  { %v501_v15 = vmul.f32 %v496_v43, %v1279_v55  ;;  %v519_v55 = vmul.f32 %v1288_v61, %v1288_v61 }
 0x4ff   :  { %505 = vrot.lane.b32.xlu2 %v501_v15, %s1016_s14  ;;  %v566_v56 = vmul.f32 %v565_v27, %v519_v55  ;;  %v689_v62 = vmul.f32 %v688_v49, %v519_v55 }
 0x501   :  { %572 = vrot.lane.b32.xlu1 %v567_v45, %s1017_s17 }
 0x505   :  { %523 = vrot.lane.b32.xlu0 %v1288_v61, %s1017_s17 }
 0x507   :  { %710 = vrot.lane.b32.xlu2 %v1349_v60, %s1018_s0 }
 0x509   :  { %548 = vrot.lane.b32.xlu1 %v544_v9, %s1017_s17  ;;  %v824_v9 = vperm.slane %v1369_v51, 7 }
 0x50d   :  { %525 = vrot.lane.b32.xlu0 %v1295_v63, %s1017_s17 }
 0x50f   :  { %744 = vperm.xlu2 %941, %v1242_v6  }
 0x511   :  { %558 = vrot.lane.b32.xlu1 %v556_v32, %s1017_s17 }
 0x515   :  { %587 = vrot.lane.b32.xlu0 %v1349_v60, %s1017_s17 }
 0x517   :  { %695 = vrot.lane.b32.xlu2 %v690_v50, %s1017_s17 }
 0x518   :  { %944 = vset.pattern.permute.xlu2 %v1022_v48 }
 0x519   :  { %708 = vrot.lane.b32.xlu1 %v1242_v6, %s1018_s0 }
 0x51d   :  { %538 = vperm.xlu0 %940, %v1349_v60  }
 0x51f   :  { %733 = vrot.lane.b32.xlu2 %v728_v53, %s1017_s17 }
 0x521   :  { %718 = vrot.lane.b32.xlu1 %v1349_v60, %s1023_s2 }
 0x525   :  { %570 = vrot.lane.b32.xlu0 %v566_v56, %s1017_s17 }
 0x526   :  { %942 = vset.pattern.permute.xlu0 %v1021_v29 }
 0x527   :  { %703 = vrot.lane.b32.xlu2 %v701_v59, %s1017_s17  ;;  %v489_v57 = vpop.xlane.xlu1 %488 }
 0x528   :  { %v1383_v1 = vmul.f32 %v517_v33, %v489_v57 }
 0x529   :  { %693 = vrot.lane.b32.xlu1 %v689_v62, %s1017_s17 }
 0x52d   :  { %604 = vrot.lane.b32.xlu0 %v599_v2, %s1017_s17 }
 0x52f   :  { %778 = vperm.xlu2 %944, %v1349_v60  }
 0x531   :  { %731 = vrot.lane.b32.xlu1 %v727_v0, %s1017_s17 }
 0x535   :  { %580 = vrot.lane.b32.xlu0 %v578_v3, %s1017_s17 }
 0x537   :  { %798 = vrot.lane.b32.xlu2 %v796_v58, %s1017_s17 }
 0x539   :  { %760 = vrot.lane.b32.xlu1 %v755_v44, %s1017_s17 }
 0x53d   :  { %716 = vrot.lane.b32.xlu0 %v1242_v6, %s1023_s2 }
 0x53f   :  { %v586_v17 = vpop.permute.xlu1 %585  ;;  %839 = vrot.lane.b32.xlu2 %v950_v21, %s1017_s17 }
 0x541   :  { %774 = vperm.xlu1 %943, %v1242_v6   ;;  %v594_v6 = vmul.f32 %v1349_v60, %v1266_v38 }
 0x545   :  { %748 = vperm.xlu0 %942, %v1349_v60  }
 0x549   :  { %790 = vrot.lane.b32.xlu1 %v785_v5, %s1017_s17  ;;  %v541_v5 = vmul.f32 %v1322_v12, %v1251_v24 }
 0x54d   :  { %758 = vrot.lane.b32.xlu0 %v754_v7, %s1017_s17 }
 0x54e   :  { %949 = vset.pattern.permute.xlu0 %v1022_v48 }
 0x555   :  { %323 = vrot.lane.b32.xlu0 %v318_v10, %s1016_s14 }
 0x559   :  { %v506_v18 = vpop.permute.xlu2 %505 }
 0x55a   :  { %v511_v44 = vsel %vm60_vm0, %v506_v18, 0.0 }
 0x55d   :  { %507 = vrot.lane.b32.xlu0 %v502_v11, %s1016_s14 }
 0x561   :  { %v711_v36 = vpop.permute.xlu2 %710 }
 0x564   :  { %v484_v16 = vpop.xlane.xlu0 %483 }
 0x565   :  { %v564_v19 = vmul.f32 %v1270_v39, %v484_v16  ;;  %768 = vrot.lane.b32.xlu0 %v766_v14, %s1017_s17 }
 0x569   :  { %v1426_v29 = vpop.permute.xlu2 %744 }
 0x56b   :  { %v437_v33 = vpop.permute.xlu1 %436 }
 0x56c   :  { %921 = vmatmul.msk.f32.gmra.mxu2 %vm60_vm0, %v437_v33 }
 0x56d   :  { %788 = vrot.lane.b32.xlu0 %v784_v37, %s1017_s17 }
 0x571   :  { %v696_v43 = vpop.permute.xlu2 %695 }
 0x572   :  { %v700_v51 = vadd.f32 %v696_v43, %v1273_v40  ;;  %v751_v43 = vmul.f32 %v1426_v29, %v1251_v24 }
 0x573   :  { %v573_v26 = vpop.permute.xlu1 %572  ;;  %328 = vadd.xlane.f32.xlu1 %v327_v22 }
 0x574   :  { %v577_v28 = vadd.f32 %v573_v26, %v564_v19 }
 0x575   :  { %813 = vrot.lane.b32.xlu0 %v811_v23, %s1017_s17 }
 0x577   :  { %v524_v39 = vpop.permute.xlu0 %523 }
 0x578   :  { %v529_v25 = vmul.f32 %v524_v39, %v1251_v24 }
 0x579   :  { %v734_v49 = vpop.permute.xlu2 %733 }
 0x57a   :  { %v591_v30 = vmul.f32 %v586_v17, %v529_v25 }
 0x57b   :  { %v549_v54 = vpop.permute.xlu1 %548 }
 0x57c   :  { %v595_v34 = vadd.f32 %v593_v31, %v591_v30  ;;  %v554_v7 = vadd.f32 %v549_v54, %v541_v5 }
 0x57e   :  { %v608_v47 = vadd.f32 %v1408_v8, %v595_v34 }
 0x57f   :  { %v526_v35 = vpop.permute.xlu0 %525 }
 0x580   :  { %v530_v41 = vmul.f32 %v526_v35, %v1266_v38  ;;  %v610_v11 = vmul.f32 2.0, %v608_v47 }
 0x581   :  { %v704_v57 = vpop.permute.xlu2 %703 }
 0x582   :  { %v715_v42 = vmul.f32 %v711_v36, %v530_v41  ;;  %v707_v0 = vadd.f32 %v704_v57, %v700_v51 }
 0x583   :  { %v559_v15 = vpop.permute.xlu1 %558 }
 0x584   :  { %v1449_v10 = vadd.f32 %v559_v15, %v554_v7 }
 0x586   :  { %v1455_v12 = vmul.f32 %v1449_v10, %v1449_v10 }
 0x587   :  { %v588_v27 = vpop.permute.xlu0 %587 }
 0x588   :  { %v592_v45 = vmul.f32 %v588_v27, %v530_v41 }
 0x58a   :  { %v596_v32 = vadd.f32 %v594_v6, %v592_v45  ;;  %v1024_v45 = vmov 14  }
 0x58b   :  { %v709_v48 = vpop.permute.xlu1 %708  ;;  %945 = vset.pattern.permute.xlu2 %v1024_v45 }
 0x58c   :  { %826 = vrot.lane.b32.xlu1 %v824_v9, %s1017_s17  ;;  %v714_v26 = vmul.f32 %v709_v48, %v529_v25 }
 0x58f   :  { %v539_v50 = vpop.permute.xlu0 %538 }
 0x590   :  { %v542_v52 = vmul.f32 %v539_v50, %v1266_v38 }
 0x592   :  { %v555_v53 = vadd.f32 %v551_v13, %v542_v52 }
 0x593   :  { %v719_v55 = vpop.permute.xlu1 %718 }
 0x594   :  { %v723_v56 = vmul.f32 %v719_v55, %v1266_v38 }
 0x596   :  { %v725_v59 = vadd.f32 %v723_v56, %v715_v42 }
 0x597   :  { %v571_v62 = vpop.permute.xlu0 %570 }
 0x598   :  { %v738_v2 = vadd.f32 %v734_v49, %v725_v59  ;;  %v576_v60 = vadd.f32 %v571_v62, %v1331_v20  ;;  %v1451_v20 = vadd.f32 %v559_v15, %v555_v53 }
 0x59a   :  { %v740_v3 = vmul.f32 2.0, %v738_v2  ;;  %v1459_v8 = vmul.f32 %v1451_v20, %v1451_v20 }
 0x59b   :  { %v694_v16 = vpop.permute.xlu1 %693 }
 0x59c   :  { %v1443_v4 = vadd.f32 %v740_v3, %v707_v0  ;;  %v699_v39 = vadd.f32 %v694_v16, %v1383_v1  ;;  %v805_v0 = vmul.f32 2.0, %v1449_v10  ;;  %v806_v3 = vmul.f32 2.0, %v1451_v20 }
 0x59e   :  { %v706_v34 = vadd.f32 %v704_v57, %v699_v39 }
 0x59f   :  { %v605_v58 = vpop.permute.xlu0 %604  ;;  %512 = vadd.xlane.f32.xlu0 %v511_v44 }
 0x5a0   :  { %v609_v46 = vadd.f32 %v605_v58, %v596_v32 }
 0x5a2   :  { %v611_v13 = vmul.f32 2.0, %v609_v46 }
 0x5a3   :  { %v732_v31 = vpop.permute.xlu1 %731 }
 0x5a7   :  { %v581_v40 = vpop.permute.xlu0 %580 }
 0x5a8   :  { %v583_v14 = vadd.f32 %v581_v40, %v576_v60  ;;  %v584_v17 = vadd.f32 %v581_v40, %v577_v28 }
 0x5aa   :  { %v612_v18 = vadd.f32 %v610_v11, %v583_v14  ;;  %v613_v19 = vadd.f32 %v611_v13, %v584_v17  ;;  %v1474_v14 = vpop.f32.mrf.mxu2 }
 0x5ab   :  { %v761_v56 = vpop.permute.xlu1 %760 }
 0x5ac   :  { %v614_v33 = vmul.f32 0.03125, %v612_v18  ;;  %v615_v37 = vmul.f32 0.03125, %v613_v19 }
 0x5ae   :  { %v618_v36 = vsub.f32 %v614_v33, %v1455_v12  ;;  %v619_v23 = vsub.f32 %v615_v37, %v1459_v8 }
 0x5af   :  { %v717_v22 = vpop.permute.xlu0 %716 }
 0x5b0   :  { %v722_v28 = vmul.f32 %v717_v22, %v1251_v24  ;;  %v620_v25 = vmax.f32 %v618_v36, 0.0  ;;  %v621_v9 = vmax.f32 %v619_v23, 0.0  ;;  %v1025_v23 = vmov 15  }
 0x5b2   :  { %v724_v30 = vadd.f32 %v722_v28, %v714_v26  ;;  %v622_v1 = vadd.f32 1e-05, %v620_v25  ;;  %v623_v6 = vadd.f32 1e-05, %v621_v9 }
 0x5b3   :  { %v775_v18 = vpop.permute.xlu1 %774 }
 0x5b4   :  { %v737_v54 = vadd.f32 %v732_v31, %v724_v30  ;;  %981 = vrsqrt.f32 %v622_v1  ;;  %vm630_vm13 = vweird.f32 %v622_v1  ;;  %vm640_vm15 = vweird.f32 %v623_v6 }
 0x5b5   :  { %983 = vrsqrt.f32 %v623_v6 }
 0x5b6   :  { %v739_v35 = vmul.f32 2.0, %v737_v54 }
 0x5b7   :  { %v749_v21 = vpop.permute.xlu0 %748 }
 0x5b8   :  { %v741_v41 = vadd.f32 %v739_v35, %v706_v34  ;;  %v752_v42 = vmul.f32 %v749_v21, %v1266_v38  ;;  %v781_v21 = vmul.f32 %v775_v18, %v1251_v24 }
 0x5ba   :  { %v982_v49 = vpop.eup %981  ;;  %v765_v59 = vadd.f32 %v761_v56, %v752_v42 }
 0x5bb   :  { %v984_v52 = vpop.eup %983  ;;  %v625_v53 = vmul.f32 %v982_v49, %v622_v1  ;;  %vm631_vm11 = vweird.f32 %v982_v49  ;;  %v791_v54 = vpop.permute.xlu1 %790 }
 0x5bc   :  { %v635_v55 = vmul.f32 %v984_v52, %v623_v6  ;;  %vm641_vm12 = vweird.f32 %v984_v52  ;;  %vm632_vm14 = vmor %vm630_vm13, %vm631_vm11 }
 0x5bd   :  { %v626_v62 = vmul.f32 %v982_v49, %v625_v53 }
 0x5be   :  { %v636_v51 = vmul.f32 %v984_v52, %v635_v55 }
 0x5bf   :  { %v759_v15 = vpop.permute.xlu0 %758  ;;  %v627_v46 = vmul.f32 0.5, %v626_v62 }
 0x5c0   :  { %v764_v27 = vadd.f32 %v759_v15, %v751_v43  ;;  %v637_v5 = vmul.f32 0.5, %v636_v51 }
 0x5c1   :  { %v628_v11 = vsub.f32 1.5, %v627_v46 }
 0x5c2   :  { %v638_v13 = vsub.f32 1.5, %v637_v5 }
 0x5c3   :  { %v629_v17 = vmul.f32 %v982_v49, %v628_v11 }
 0x5c4   :  { %v639_v16 = vmul.f32 %v984_v52, %v638_v13 }
 0x5c5   :  { %v1477_v33 = vsel %vm632_vm14, %v982_v49, %v629_v17 }
 0x5c6   :  { %v803_v22 = vmul.f32 %v1477_v33, %v1477_v33  ;;  %v822_v6 = vmul.f32 2.0, %v1477_v33 }
 0x5c7   :  { %v324_v32 = vpop.permute.xlu0 %323 }
 0x5c8   :  { %v330_v48 = vsel %vm60_vm0, %v324_v32, 0.0 }
 0x5c9   :  { %331 = vadd.xlane.f32.xlu2 %v330_v48 }
 0x5cf   :  { %v508_v50 = vpop.permute.xlu0 %507 }
 0x5d0   :  { %v514_v29 = vsel %vm60_vm0, %v508_v50, 0.0  ;;  %vm642_vm0 = vmor %vm640_vm15, %vm641_vm12 }
 0x5d1   :  { %515 = vadd.xlane.f32.xlu1 %v514_v29 }
 0x5d7   :  { %v769_v57 = vpop.permute.xlu0 %768 }
 0x5d8   :  { %v771_v2 = vadd.f32 %v769_v57, %v764_v27  ;;  %v772_v60 = vadd.f32 %v769_v57, %v765_v59 }
 0x5da   :  { %v807_v44 = vmul.f32 %v805_v0, %v771_v2  ;;  %v808_v58 = vmul.f32 %v806_v3, %v772_v60 }
 0x5dc   :  { %v809_v47 = vsub.f32 %v741_v41, %v807_v44  ;;  %v810_v7 = vsub.f32 %v1443_v4, %v808_v58  ;;  %v1479_v4 = vsel %vm642_vm0, %v984_v52, %v639_v16 }
 0x5dd   :  { %v804_v26 = vmul.f32 %v1479_v4, %v1479_v4  ;;  %v823_v32 = vmul.f32 2.0, %v1479_v4 }
 0x5df   :  { %v789_v40 = vpop.permute.xlu0 %788 }
 0x5e0   :  { %v794_v43 = vadd.f32 %v789_v40, %v781_v21 }
 0x5e1   :  { %662 = vperm.xlu2 %945, %v1474_v14  }
 0x5e6   :  { %v329_v34 = vpop.xlane.xlu1 %328 }
 0x5e7   :  { %v814_v19 = vpop.permute.xlu0 %813 }
 0x5e8   :  { %v816_v37 = vmul.f32 %v814_v19, %v1455_v12  ;;  %v817_v36 = vmul.f32 %v814_v19, %v1459_v8  ;;  %v646_v12 = vmul.f32 %v1474_v14, %v1288_v61  ;;  %v779_v8 = vpop.permute.xlu2 %778 }
 0x5e9   :  { %946 = vset.pattern.permute.xlu2 %v1025_v23  ;;  %v782_v35 = vmul.f32 %v779_v8, %v1266_v38 }
 0x5ea   :  { %v818_v28 = vadd.f32 %v816_v37, %v809_v47  ;;  %v819_v39 = vadd.f32 %v817_v36, %v810_v7  ;;  %677 = vperm.xlu2 %946, %v1474_v14  }
 0x5eb   :  { %v795_v42 = vadd.f32 %v791_v54, %v782_v35 }
 0x5ec   :  { %v820_v30 = vmul.f32 %v818_v28, %v803_v22  ;;  %v821_v31 = vmul.f32 %v819_v39, %v804_v26 }
 0x5ef   :  { %v1494_v41 = vpop.f32.mrf.mxu2 }
 0x5f0   :  { %v799_v15 = vpop.permute.xlu2 %798  ;;  %v647_v1 = vmul.f32 %v1494_v41, %v1295_v63 }
 0x5f1   :  { %v802_v25 = vadd.f32 %v799_v15, %v795_v42  ;;  %v801_v61 = vadd.f32 %v799_v15, %v794_v43 }
 0x5f2   :  { %650 = vrot.lane.b32.xlu2 %v646_v12, %s1017_s17 }
 0x5f3   :  { %947 = vset.pattern.permute.xlu2 %v1024_v45 }
 0x5f8   :  { %v840_v55 = vpop.permute.xlu2 %839 }
 0x5fa   :  { %667 = vperm.xlu2 %947, %v1494_v41  }
 0x5fe   :  { %v827_v27 = vpop.permute.xlu1 %826 }
 0x5ff   :  { %v829_v9 = vmul.f32 %v827_v27, %v1449_v10  ;;  %v830_v45 = vmul.f32 %v827_v27, %v1451_v20 }
 0x601   :  { %v831_v48 = vsub.f32 %v801_v61, %v829_v9  ;;  %v832_v49 = vsub.f32 %v802_v25, %v830_v45 }
 0x602   :  { %652 = vrot.lane.b32.xlu2 %v647_v1, %s1017_s17  ;;  %s1027_s17 = smov 128  }
 0x603   :  { %v833_v50 = vmul.f32 %v831_v48, %v822_v6  ;;  %v834_v52 = vmul.f32 %v832_v49, %v823_v32  ;;  %948 = vset.pattern.permute.xlu2 %v1025_v23 }
 0x605   :  { %v835_v29 = vadd.f32 %v833_v50, %v820_v30  ;;  %v836_v53 = vadd.f32 %v834_v52, %v821_v31 }
 0x607   :  { %v842_v56 = vadd.f32 %v840_v55, %v835_v29  ;;  %v843_v2 = vadd.f32 %v840_v55, %v836_v53 }
 0x609   :  { %v844_v59 = vmul.f32 %v842_v56, %v329_v34 }
 0x60a   :  { %681 = vperm.xlu2 %948, %v1494_v41  }
 0x60b   :  { %v846_v63 = vmax.f32 %v844_v59, 1e-16 }
 0x60d   :  { %985 = vrsqrt.f32 %v846_v63  ;;  %vm854_vm3 = vweird.f32 %v846_v63 }
 0x612   :  { %v513_v46 = vpop.xlane.xlu0 %512 }
 0x613   :  { %v986_v51 = vpop.eup %985  ;;  %v644_v47 = vmul.f32 %v513_v46, %v1251_v24 }
 0x614   :  { %v849_v0 = vmul.f32 %v986_v51, %v846_v63  ;;  %vm855_vm1 = vweird.f32 %v986_v51 }
 0x615   :  { %vm856_vm4 = vmor %vm854_vm3, %vm855_vm1 }
 0x616   :  { %v850_v58 = vmul.f32 %v986_v51, %v849_v0 }
 0x618   :  { %v851_v5 = vmul.f32 0.5, %v850_v58 }
 0x61a   :  { %v852_v11 = vsub.f32 1.5, %v851_v5 }
 0x61c   :  { %v853_v37 = vmul.f32 %v986_v51, %v852_v11 }
 0x61e   :  { %v857_v24 = vsel %vm856_vm4, %v986_v51, %v853_v37 }
 0x63c   :  { %v332_v57 = vpop.xlane.xlu2 %331 }
 0x63d   :  { %v845_v60 = vmul.f32 %v843_v2, %v332_v57 }
 0x63f   :  { %v847_v44 = vmax.f32 %v845_v60, 1e-16 }
 0x641   :  { %987 = vrsqrt.f32 %v847_v44  ;;  %vm864_vm6 = vweird.f32 %v847_v44 }
 0x644   :  { %v663_v62 = vpop.permute.xlu2 %662  ;;  %v516_v39 = vpop.xlane.xlu1 %515 }
 0x645   :  { %v670_v17 = vmul.f32 %v663_v62, %v1449_v10  ;;  %v645_v10 = vmul.f32 %v516_v39, %v1266_v38 }
 0x647   :  { %v988_v13 = vpop.eup %987 }
 0x648   :  { %v859_v19 = vmul.f32 %v988_v13, %v847_v44  ;;  %vm865_vm5 = vweird.f32 %v988_v13 }
 0x649   :  { %vm866_vm7 = vmor %vm864_vm6, %vm865_vm5 }
 0x64a   :  { %v860_v26 = vmul.f32 %v988_v13, %v859_v19 }
 0x64c   :  { %v678_v3 = vpop.permute.xlu2 %677  ;;  %v861_v30 = vmul.f32 0.5, %v860_v26 }
 0x64e   :  { %v862_v54 = vsub.f32 1.5, %v861_v30 }
 0x650   :  { %v863_v34 = vmul.f32 %v988_v13, %v862_v54 }
 0x652   :  { %v867_v43 = vsel %vm866_vm7, %v988_v13, %v863_v34 }
 0x654   :  { %v651_v7 = vpop.permute.xlu2 %650 }
 0x655   :  { %v656_v40 = vadd.f32 %v651_v7, %v644_v47 }
 0x657   :  { %v658_v16 = vadd.f32 %v656_v40, %v1474_v14 }
 0x659   :  { %v672_v18 = vsub.f32 %v658_v16, %v670_v17 }
 0x65b   :  { %v674_v36 = vmul.f32 %v672_v18, %v1477_v33 }
 0x65c   :  { %v668_v23 = vpop.permute.xlu2 %667 }
 0x65d   :  { %v684_v22 = vadd.f32 %v678_v3, %v674_v36  ;;  %v671_v12 = vmul.f32 %v668_v23, %v1451_v20 }
 0x65f   :  { %v868_v28 = vmul.f32 %v857_v24, %v684_v22 }
 0x661   :  { %872 = vrot.lane.b32.xlu0 %v868_v28, %s1018_s0 }
 0x664   :  { %v653_v14 = vpop.permute.xlu2 %652 }
 0x665   :  { %v657_v31 = vadd.f32 %v653_v14, %v645_v10 }
 0x667   :  { %v659_v33 = vadd.f32 %v657_v31, %v1494_v41 }
 0x669   :  { %v673_v8 = vsub.f32 %v659_v33, %v671_v12 }
 0x66b   :  { %v675_v35 = vmul.f32 %v673_v8, %v1479_v4 }
 0x66c   :  { %v682_v21 = vpop.permute.xlu2 %681 }
 0x66d   :  { %v685_v42 = vadd.f32 %v682_v21, %v675_v35 }
 0x66f   :  { %v869_v15 = vmul.f32 %v867_v43, %v685_v42 }
 0x671   :  { %874 = vrot.lane.b32.xlu1 %v869_v15, %s1018_s0 }
 0x6d3   :  { %v873_v38 = vpop.permute.xlu0 %872 }
 0x6d4   :  { %v878_v27 = vsel %vm134_vm2, %v873_v38, 0.0 }
 0x6d5   :  { %880 = vst [vmem:[#allocation2] sm:$0xff] %v878_v27 }
 0x6e3   :  { %v875_v20 = vpop.permute.xlu1 %874 }
 0x6e4   :  { %v879_v4 = vsel %vm134_vm2, %v875_v20, 0.0 }
 0x6e5   :  { %881 = vst [vmem:[#allocation2 + $0x8] sm:$0xff] %v879_v4 }
 0x6e6   :  { %894 = dma.vmem_to_hbm [thread:$0]  %s887_s15, 256, %s889_s7, [#allocation3], %s1027_s17, %s1027_s17, %s1028_s18  }
 0x6e7   :  { %1013 = dma.done.wait [#allocation3], 256  }
 0x6e8   :  { %1014 = vsyncadd [#allocation3], 4294967040 }
 0x6e9   :  { %899 = vsyncpa [#allocation3], 1 }

</bundles_post_ra>
